<compile_context>
chip_gen: v5e
topology: v5e:2x2
jax: 0.10.0
libtpu: 0.0.40
codegen_flags: <defaults>
</compile_context>

<pallas_src>
import functools

import jax
import jax.numpy as jnp
from jax.experimental import pallas as pl
from jax.experimental.pallas import tpu as pltpu


def _scal_conv1d_kernel(x_hbm, w_ref, b_ref, o_ref, xbuf, sem, *,
                        tl, c, k, dilation, pad, padb, n_tiles):
    """One (batch b, length-tile t) step.

    x_hbm : (B, L, C)        raw HBM ref (manual halo DMA)
    w_ref : (K*C_in, C_out)  weights in VMEM (resident, constant index map)
    b_ref : (1, C)           f32 bias in VMEM
    o_ref : (1, TL, C)       output tile (auto-pipelined)
    xbuf  : (nbuf, TL+padb+pad, C) VMEM halo buffers (double-buffered if
            n_tiles > 1); xbuf[slot] row r <-> position  tile*TL - padb + r
    sem   : (nbuf,)          DMA semaphores
    """
    buf_rows = tl + padb + pad
    b = pl.program_id(0)
    t = pl.program_id(1)

    def halo_dma(tt, slot, issue):
        """Start (issue=True) or wait on (issue=False) the halo-window DMA of
        length-tile `tt` into xbuf[slot].  Start/wait use identical shapes per
        branch so the semaphore accounting always matches."""

        def run(src_start, nrows, dst_start):
            cp = pltpu.make_async_copy(
                x_hbm.at[b, pl.ds(src_start, nrows), :],
                xbuf.at[slot, pl.ds(dst_start, nrows), :],
                sem.at[slot])
            cp.start() if issue else cp.wait()

        @pl.when(tt == 0)
        def _():  # first tile: left halo is zeros, right halo is real data
            if issue and pad > 0:
                xbuf[slot, pl.ds(0, padb), :] = jnp.zeros((padb, c), xbuf.dtype)
            run(0, tl + pad, padb)

        @pl.when(tt == n_tiles - 1)
        def _():  # last tile: right halo is zeros, left halo is real data
            if issue and pad > 0:
                xbuf[slot, pl.ds(tl + padb, pad), :] = (
                    jnp.zeros((pad, c), xbuf.dtype))
            run((n_tiles - 1) * tl - padb, tl + padb, 0)

        if n_tiles > 2:
            @pl.when(jnp.logical_and(tt > 0, tt < n_tiles - 1))
            def _():  # interior tile: full window is real data
                run(pl.multiple_of(tt * tl - padb, 8), buf_rows, 0)

    # ---- fill / prefetch the halo window(s) in VMEM -------------------------
    if n_tiles == 1:
        # Single tile covering the whole sequence: zero both halos, sync copy.
        slot = 0
        if pad > 0:
            xbuf[0, pl.ds(0, padb), :] = jnp.zeros((padb, c), xbuf.dtype)
            xbuf[0, pl.ds(tl + padb, pad), :] = jnp.zeros((pad, c), xbuf.dtype)
        cp = pltpu.make_async_copy(x_hbm.at[b, pl.ds(0, tl), :],
                                   xbuf.at[0, pl.ds(padb, tl), :], sem.at[0])
        cp.start()
        cp.wait()
    else:
        slot = t % 2

        @pl.when(t == 0)
        def _():
            # Prime this batch: fetch tile 0 (exposed), then start tile 1.
            halo_dma(t, slot, issue=True)
            halo_dma(t, slot, issue=False)
            halo_dma(t + 1, 1 - slot, issue=True)

        @pl.when(t > 0)
        def _():
            # Consume the window prefetched at step t-1; prefetch tile t+1.
            halo_dma(t, slot, issue=False)

            @pl.when(t < n_tiles - 1)
            def _():
                halo_dma(t + 1, 1 - slot, issue=True)

    # ---- fused-tap matmul: (TL, K*C) @ (K*C, C) on the MXU ------------------
    off0 = padb - pad  # static; tap i reads rows [off0 + i*dil, off0 + i*dil + TL)
    parts = [xbuf[slot, pl.ds(off0 + i * dilation, tl), :] for i in range(k)]
    stacked = parts[0] if k == 1 else jnp.concatenate(parts, axis=1)
    acc = jnp.dot(stacked, w_ref[...], preferred_element_type=jnp.float32)
    acc = acc + b_ref[...]                       # (1, C) f32 broadcast
    o_ref[0, :, :] = acc.astype(o_ref.dtype)


def _vmem_estimate_bytes(tl, c, k, pad, padb, itemsize, nbuf=2):
    buf_rows = tl + padb + pad
    xbuf = nbuf * buf_rows * c * itemsize        # halo scratch buffers
    stacked = tl * k * c * itemsize              # in-kernel concat temp
    acc = tl * c * 4                             # f32 matmul result
    out_bufs = 2 * tl * c * itemsize             # double-buffered output tile
    w = 2 * k * c * c * itemsize                 # weight block (+1 spare buf)
    bias = 2 * c * 4
    return xbuf + stacked + acc + out_bufs + w + bias


def _choose_tile_len(length, c, k, pad, padb, itemsize, budget_bytes, max_tl=4096):
    """Largest multiple-of-8 divisor of `length` whose VMEM footprint fits."""
    best = None
    for cand in range(8, min(length, max_tl) + 1, 8):
        if length % cand != 0 or cand < padb or cand < pad:
            continue
        if _vmem_estimate_bytes(cand, c, k, pad, padb, itemsize) <= budget_bytes:
            best = cand
    return best if best is not None else length   # fall back to a single tile


def scal_conv1d(x, weight, bias, *, dilation=1, tile_len=None,
                vmem_budget_bytes=16 * 2**20):
    """ScalConv1d forward (edges_to_nodes=False): (B, L, C) -> (B, L, C).

    x      : (B, L, C)         (f32 or bf16; bf16 takes the fast MXU path)
    weight : (C_out, C_in, K)  torch Conv1d layout
    bias   : (C_out,)
    """
    batch, length, chan = x.shape
    c_out, c_in, kernsz = weight.shape
    if c_out != chan or c_in != chan:
        raise ValueError("ScalConv1d requires C_out == C_in == chan")
    if kernsz % 2 != 1:
        # TODO(synk): edges_to_nodes=True (even kernel, output length L+1) not implemented.
        raise NotImplementedError("even-kernel (edges_to_nodes=True) path not implemented")

    pad = dilation * (kernsz - 1) // 2           # 'same' padding, odd kernel
    itemsize = jnp.dtype(x.dtype).itemsize
    sublane = {4: 8, 2: 16, 1: 32}.get(itemsize, 8)
    padb = ((pad + sublane - 1) // sublane) * sublane if pad > 0 else 0

    if tile_len is None:
        tile_len = _choose_tile_len(length, chan, kernsz, pad, padb,
                                    itemsize, vmem_budget_bytes)
    if length % tile_len != 0:
        raise ValueError("tile_len must divide the sequence length")
    if tile_len != length and tile_len % 8 != 0:
        raise ValueError("tile_len must be a multiple of 8 (or equal to length)")
    n_tiles = length // tile_len
    if n_tiles > 1 and tile_len < max(padb, pad):
        raise ValueError("tile_len too small for the convolution halo")
    buf_rows = tile_len + padb + pad
    nbuf = 1 if n_tiles == 1 else 2

    # Weight as one (K*C_in, C_out) matrix so the K taps fuse into one matmul:
    # w_flat[k*C + i, o] = weight[o, i, k].
    w_flat = jnp.transpose(weight, (2, 1, 0)).reshape(kernsz * chan, chan).astype(x.dtype)
    b2 = bias.reshape(1, chan).astype(jnp.float32)

    kernel = functools.partial(
        _scal_conv1d_kernel, tl=tile_len, c=chan, k=kernsz,
        dilation=dilation, pad=pad, padb=padb, n_tiles=n_tiles)

    est = _vmem_estimate_bytes(tile_len, chan, kernsz, pad, padb, itemsize, nbuf)
    vmem_limit = int(min(100 * 2**20, max(32 * 2**20, 2 * est)))
    flops = 2 * batch * length * chan * chan * kernsz
    bytes_accessed = int(x.size * itemsize + w_flat.size * itemsize
                         + b2.size * 4 + batch * length * chan * itemsize)

    return pl.pallas_call(
        kernel,
        out_shape=jax.ShapeDtypeStruct((batch, length, chan), x.dtype),
        grid_spec=pltpu.PrefetchScalarGridSpec(
            num_scalar_prefetch=0,
            grid=(batch, n_tiles),
            in_specs=[
                pl.BlockSpec(memory_space=pl.ANY),                      # x stays in HBM
                pl.BlockSpec((kernsz * chan, chan), lambda b, t: (0, 0)),
                pl.BlockSpec((1, chan), lambda b, t: (0, 0)),
            ],
            out_specs=pl.BlockSpec((1, tile_len, chan), lambda b, t: (b, t, 0)),
            scratch_shapes=[
                pltpu.VMEM((nbuf, buf_rows, chan), x.dtype),  # halo window buffers
                pltpu.SemaphoreType.DMA((nbuf,)),
            ],
        ),
        compiler_params=pltpu.CompilerParams(
            # batch axis may be split across TensorCores; the length-tile axis
            # carries the prefetch chain so it stays "arbitrary".
            dimension_semantics=("parallel", "arbitrary"),
            vmem_limit_bytes=vmem_limit,
        ),
        cost_estimate=pl.CostEstimate(
            flops=flops, transcendentals=0, bytes_accessed=bytes_accessed),
    )(x, w_flat, b2)


def _reference(x, weight, bias, *, dilation=1):
    """Pure-JAX reference matching torch Conv1d with padding='same' (f32)."""
    _, length, _ = x.shape
    kernsz = weight.shape[2]
    pad = dilation * (kernsz - 1) // 2
    x_pad = jnp.pad(x, ((0, 0), (pad, pad), (0, 0)))
    y = jnp.zeros(x.shape, jnp.float32)
    for t in range(kernsz):
        xs = jax.lax.dynamic_slice_in_dim(x_pad, t * dilation, length, axis=1)
        y = y + jnp.einsum("blc,oc->blo", xs, weight[:, :, t],
                           precision=jax.lax.Precision.HIGHEST)
    return y + bias[None, None, :]


def _run_case(name, *, batch, length, chan, kernsz, dilation, dtype,
              tile_len, atol, rtol):
    key = jax.random.PRNGKey(0)
    kx, kw, kb = jax.random.split(key, 3)
    x32 = jax.random.normal(kx, (batch, length, chan), dtype=jnp.float32)
    w32 = 0.1 * jax.random.normal(kw, (chan, chan, kernsz), dtype=jnp.float32)
    b32 = 0.1 * jax.random.normal(kb, (chan,), dtype=jnp.float32)

    x = x32.astype(dtype)
    y = scal_conv1d(x, w32, b32, dilation=dilation, tile_len=tile_len)
    y = jax.block_until_ready(y)
    assert y.shape == (batch, length, chan) and y.dtype == jnp.dtype(dtype)

    # Reference on exactly the (possibly bf16-rounded) operands the kernel sees.
    w_used = w32.astype(dtype).astype(jnp.float32)
    y_ref = _reference(x.astype(jnp.float32), w_used, b32, dilation=dilation)
    err = float(jnp.max(jnp.abs(y.astype(jnp.float32) - y_ref)))
    ok = bool(jnp.allclose(y.astype(jnp.float32), y_ref, atol=atol, rtol=rtol))
    assert ok, f"{name}: mismatch vs reference, max |err| = {err}"


if __name__ == "__main__":
    # Multi-tile path (first / middle / last halo branches + prefetch chain),
    # lane-dense C = 128.
    _run_case("f32_multi_tile", batch=2, length=512, chan=128, kernsz=3,
              dilation=1, dtype=jnp.float32, tile_len=128, atol=5e-2, rtol=5e-2)
    # Single-tile path with dilation and a non-128 channel count.
    _run_case("f32_dilated", batch=2, length=256, chan=64, kernsz=5,
              dilation=2, dtype=jnp.float32, tile_len=None, atol=5e-2, rtol=5e-2)
    # bf16 inputs / weights (MXU fast path), 2-tile prefetch path, f32 accumulation.
    _run_case("bf16", batch=1, length=256, chan=128, kernsz=3,
              dilation=1, dtype=jnp.bfloat16, tile_len=128, atol=1e-1, rtol=1e-1)
    print("KERNEL_OK")
</pallas_src>

<mosaic_0001>
module attributes {stable_mosaic.version = 11 : i64} {
  func.func @_scal_conv1d_kernel(%arg0: i32, %arg1: i32, %arg2: memref<2x512x128xf32, #tpu.memory_space<any>>, %arg3: memref<384x128xf32, #tpu.memory_space<vmem>>, %arg4: memref<1x128xf32, #tpu.memory_space<vmem>>, %arg5: memref<1x128x128xf32, #tpu.memory_space<vmem>>, %arg6: memref<2x137x128xf32, #tpu.memory_space<vmem>>, %arg7: memref<2x!tpu.dma_semaphore, #tpu.memory_space<semaphore_mem>>) attributes {dimension_semantics = [#tpu.dimension_semantics<parallel>, #tpu.dimension_semantics<arbitrary>], iteration_bounds = array<i64: 2, 4>, scalar_prefetch = 0 : i64, scratch_operands = 2 : i64, tpu.core_type = #tpu.core_type<tc>, window_params = [{}, {pipeline_mode = #tpu.pipeline_mode<synchronous>, transform_indices = @transform_1, window_bounds = array<i64: 384, 128>}, {pipeline_mode = #tpu.pipeline_mode<synchronous>, transform_indices = @transform_2, window_bounds = array<i64: 1, 128>}, {transform_indices = @transform_3, window_bounds = array<i64: 1, 128, 128>}]} {
    %c2_i32 = arith.constant 2 : i32
    %c0_i32 = arith.constant 0 : i32
    %0 = arith.cmpi eq, %c2_i32, %c0_i32 : i32
    %c1_i32 = arith.constant 1 : i32
    %1 = arith.select %0, %c1_i32, %c2_i32 : i32
    %2 = arith.remsi %arg1, %1 : i32
    %c0_i32_0 = arith.constant 0 : i32
    %3 = arith.cmpi ne, %2, %c0_i32_0 : i32
    %c0_i32_1 = arith.constant 0 : i32
    %4 = arith.cmpi slt, %2, %c0_i32_1 : i32
    %c0_i32_2 = arith.constant 0 : i32
    %5 = arith.cmpi slt, %1, %c0_i32_2 : i32
    %6 = arith.xori %4, %5 : i1
    %7 = arith.andi %6, %3 : i1
    %8 = arith.addi %2, %1 : i32
    %9 = arith.select %7, %8, %2 : i32
    %c0_i32_3 = arith.constant 0 : i32
    %10 = arith.cmpi eq, %arg1, %c0_i32_3 : i32
    %11 = arith.extui %10 : i1 to i32
    %c0_i32_4 = arith.constant 0 : i32
    %12 = arith.cmpi ne, %11, %c0_i32_4 : i32
    scf.if %12 {
      %c0_i32_16 = arith.constant 0 : i32
      %34 = arith.cmpi eq, %arg1, %c0_i32_16 : i32
      %35 = arith.extui %34 : i1 to i32
      %c0_i32_17 = arith.constant 0 : i32
      %36 = arith.cmpi ne, %35, %c0_i32_17 : i32
      scf.if %36 {
        %cst_38 = arith.constant 0.000000e+00 : f32
        %69 = vector.broadcast %cst_38 : f32 to vector<8x128xf32>
        %70 = arith.index_cast %9 : i32 to index
        %c0_39 = arith.constant 0 : index
        %c0_40 = arith.constant 0 : index
        %71 = vector.load %arg6[%70, %c0_39, %c0_40] : memref<2x137x128xf32, #tpu.memory_space<vmem>>, vector<1x8x128xf32>
        %72 = vector.shape_cast %71 : vector<1x8x128xf32> to vector<8x128xf32>
        %73 = vector.shape_cast %69 : vector<8x128xf32> to vector<1x8x128xf32>
        tpu.vector_store %arg6[%70, %c0_39, %c0_40], %73 {strides = array<i32>} : memref<2x137x128xf32, #tpu.memory_space<vmem>>, vector<1x8x128xf32>,
        %c0_i32_41 = arith.constant 0 : i32
        %c0_i32_42 = arith.constant 0 : i32
        %74 = tpu.memref_slice %arg2[%arg0, %c0_i32_41, %c0_i32_42] : memref<2x512x128xf32, #tpu.memory_space<any>> -> memref<1x129x128xf32, #tpu.memory_space<any>>
        %75 = tpu.memref_squeeze %74 : memref<1x129x128xf32, #tpu.memory_space<any>> -> memref<129x128xf32, #tpu.memory_space<any>>
        %c8_i32 = arith.constant 8 : i32
        %c0_i32_43 = arith.constant 0 : i32
        %76 = tpu.memref_slice %arg6[%9, %c8_i32, %c0_i32_43] : memref<2x137x128xf32, #tpu.memory_space<vmem>> -> memref<1x129x128xf32, #tpu.memory_space<vmem>>
        %77 = tpu.memref_squeeze %76 : memref<1x129x128xf32, #tpu.memory_space<vmem>> -> memref<129x128xf32, #tpu.memory_space<vmem>>
        %78 = tpu.memref_slice %arg7[%9] : memref<2x!tpu.dma_semaphore, #tpu.memory_space<semaphore_mem>> -> memref<1x!tpu.dma_semaphore, #tpu.memory_space<semaphore_mem>>
        %79 = tpu.memref_squeeze %78 : memref<1x!tpu.dma_semaphore, #tpu.memory_space<semaphore_mem>> -> memref<!tpu.dma_semaphore, #tpu.memory_space<semaphore_mem>>
        tpu.enqueue_dma source(%75 : memref<129x128xf32, #tpu.memory_space<any>>) target(%77 : memref<129x128xf32, #tpu.memory_space<vmem>>) target_semaphore(%79 : memref<!tpu.dma_semaphore, #tpu.memory_space<semaphore_mem>>)
      } else {
      }
      %c3_i32 = arith.constant 3 : i32
      %37 = arith.cmpi eq, %arg1, %c3_i32 : i32
      %38 = arith.extui %37 : i1 to i32
      %c0_i32_18 = arith.constant 0 : i32
      %39 = arith.cmpi ne, %38, %c0_i32_18 : i32
      scf.if %39 {
        %cst_38 = arith.constant 0.000000e+00 : f32
        %69 = vector.broadcast %cst_38 : f32 to vector<1x128xf32>
        %70 = arith.index_cast %9 : i32 to index
        %c136 = arith.constant 136 : index
        %c0_39 = arith.constant 0 : index
        %71 = vector.load %arg6[%70, %c136, %c0_39] : memref<2x137x128xf32, #tpu.memory_space<vmem>>, vector<1x1x128xf32>
        %72 = vector.shape_cast %71 : vector<1x1x128xf32> to vector<1x128xf32>
        %73 = vector.shape_cast %69 : vector<1x128xf32> to vector<1x1x128xf32>
        tpu.vector_store %arg6[%70, %c136, %c0_39], %73 {strides = array<i32>} : memref<2x137x128xf32, #tpu.memory_space<vmem>>, vector<1x1x128xf32>,
        %c376_i32 = arith.constant 376 : i32
        %c0_i32_40 = arith.constant 0 : i32
        %74 = tpu.memref_slice %arg2[%arg0, %c376_i32, %c0_i32_40] : memref<2x512x128xf32, #tpu.memory_space<any>> -> memref<1x136x128xf32, #tpu.memory_space<any>>
        %75 = tpu.memref_squeeze %74 : memref<1x136x128xf32, #tpu.memory_space<any>> -> memref<136x128xf32, #tpu.memory_space<any>>
        %c0_i32_41 = arith.constant 0 : i32
        %c0_i32_42 = arith.constant 0 : i32
        %76 = tpu.memref_slice %arg6[%9, %c0_i32_41, %c0_i32_42] : memref<2x137x128xf32, #tpu.memory_space<vmem>> -> memref<1x136x128xf32, #tpu.memory_space<vmem>>
        %77 = tpu.memref_squeeze %76 : memref<1x136x128xf32, #tpu.memory_space<vmem>> -> memref<136x128xf32, #tpu.memory_space<vmem>>
        %78 = tpu.memref_slice %arg7[%9] : memref<2x!tpu.dma_semaphore, #tpu.memory_space<semaphore_mem>> -> memref<1x!tpu.dma_semaphore, #tpu.memory_space<semaphore_mem>>
        %79 = tpu.memref_squeeze %78 : memref<1x!tpu.dma_semaphore, #tpu.memory_space<semaphore_mem>> -> memref<!tpu.dma_semaphore, #tpu.memory_space<semaphore_mem>>
        tpu.enqueue_dma source(%75 : memref<136x128xf32, #tpu.memory_space<any>>) target(%77 : memref<136x128xf32, #tpu.memory_space<vmem>>) target_semaphore(%79 : memref<!tpu.dma_semaphore, #tpu.memory_space<semaphore_mem>>)
      } else {
      }
      %c0_i32_19 = arith.constant 0 : i32
      %40 = arith.cmpi sgt, %arg1, %c0_i32_19 : i32
      %c3_i32_20 = arith.constant 3 : i32
      %41 = arith.cmpi slt, %arg1, %c3_i32_20 : i32
      %42 = arith.andi %40, %41 : i1
      %43 = arith.extui %42 : i1 to i32
      %c0_i32_21 = arith.constant 0 : i32
      %44 = arith.cmpi ne, %43, %c0_i32_21 : i32
      scf.if %44 {
        %c128_i32 = arith.constant 128 : i32
        %69 = arith.muli %arg1, %c128_i32 : i32
        %c8_i32 = arith.constant 8 : i32
        %70 = arith.subi %69, %c8_i32 : i32
        %71 = tpu.assume_multiple %70, 8 : i32
        %c0_i32_38 = arith.constant 0 : i32
        %72 = tpu.memref_slice %arg2[%arg0, %71, %c0_i32_38] : memref<2x512x128xf32, #tpu.memory_space<any>> -> memref<1x137x128xf32, #tpu.memory_space<any>>
        %73 = tpu.memref_squeeze %72 : memref<1x137x128xf32, #tpu.memory_space<any>> -> memref<137x128xf32, #tpu.memory_space<any>>
        %c0_i32_39 = arith.constant 0 : i32
        %c0_i32_40 = arith.constant 0 : i32
        %74 = tpu.memref_slice %arg6[%9, %c0_i32_39, %c0_i32_40] : memref<2x137x128xf32, #tpu.memory_space<vmem>> -> memref<1x137x128xf32, #tpu.memory_space<vmem>>
        %75 = tpu.memref_squeeze %74 : memref<1x137x128xf32, #tpu.memory_space<vmem>> -> memref<137x128xf32, #tpu.memory_space<vmem>>
        %76 = tpu.memref_slice %arg7[%9] : memref<2x!tpu.dma_semaphore, #tpu.memory_space<semaphore_mem>> -> memref<1x!tpu.dma_semaphore, #tpu.memory_space<semaphore_mem>>
        %77 = tpu.memref_squeeze %76 : memref<1x!tpu.dma_semaphore, #tpu.memory_space<semaphore_mem>> -> memref<!tpu.dma_semaphore, #tpu.memory_space<semaphore_mem>>
        tpu.enqueue_dma source(%73 : memref<137x128xf32, #tpu.memory_space<any>>) target(%75 : memref<137x128xf32, #tpu.memory_space<vmem>>) target_semaphore(%77 : memref<!tpu.dma_semaphore, #tpu.memory_space<semaphore_mem>>)
      } else {
      }
      %c0_i32_22 = arith.constant 0 : i32
      %45 = arith.cmpi eq, %arg1, %c0_i32_22 : i32
      %46 = arith.extui %45 : i1 to i32
      %c0_i32_23 = arith.constant 0 : i32
      %47 = arith.cmpi ne, %46, %c0_i32_23 : i32
      scf.if %47 {
        %c0_i32_38 = arith.constant 0 : i32
        %c0_i32_39 = arith.constant 0 : i32
        %69 = tpu.memref_slice %arg2[%arg0, %c0_i32_38, %c0_i32_39] : memref<2x512x128xf32, #tpu.memory_space<any>> -> memref<1x129x128xf32, #tpu.memory_space<any>>
        %70 = tpu.memref_squeeze %69 : memref<1x129x128xf32, #tpu.memory_space<any>> -> memref<129x128xf32, #tpu.memory_space<any>>
        %c8_i32 = arith.constant 8 : i32
        %c0_i32_40 = arith.constant 0 : i32
        %71 = tpu.memref_slice %arg6[%9, %c8_i32, %c0_i32_40] : memref<2x137x128xf32, #tpu.memory_space<vmem>> -> memref<1x129x128xf32, #tpu.memory_space<vmem>>
        %72 = tpu.memref_squeeze %71 : memref<1x129x128xf32, #tpu.memory_space<vmem>> -> memref<129x128xf32, #tpu.memory_space<vmem>>
        %73 = tpu.memref_slice %arg7[%9] : memref<2x!tpu.dma_semaphore, #tpu.memory_space<semaphore_mem>> -> memref<1x!tpu.dma_semaphore, #tpu.memory_space<semaphore_mem>>
        %74 = tpu.memref_squeeze %73 : memref<1x!tpu.dma_semaphore, #tpu.memory_space<semaphore_mem>> -> memref<!tpu.dma_semaphore, #tpu.memory_space<semaphore_mem>>
        tpu.wait_dma2 semaphore(%74 : memref<!tpu.dma_semaphore, #tpu.memory_space<semaphore_mem>>) src(%70 : memref<129x128xf32, #tpu.memory_space<any>>) dst(%72 : memref<129x128xf32, #tpu.memory_space<vmem>>)
      } else {
      }
      %c3_i32_24 = arith.constant 3 : i32
      %48 = arith.cmpi eq, %arg1, %c3_i32_24 : i32
      %49 = arith.extui %48 : i1 to i32
      %c0_i32_25 = arith.constant 0 : i32
      %50 = arith.cmpi ne, %49, %c0_i32_25 : i32
      scf.if %50 {
        %c376_i32 = arith.constant 376 : i32
        %c0_i32_38 = arith.constant 0 : i32
        %69 = tpu.memref_slice %arg2[%arg0, %c376_i32, %c0_i32_38] : memref<2x512x128xf32, #tpu.memory_space<any>> -> memref<1x136x128xf32, #tpu.memory_space<any>>
        %70 = tpu.memref_squeeze %69 : memref<1x136x128xf32, #tpu.memory_space<any>> -> memref<136x128xf32, #tpu.memory_space<any>>
        %c0_i32_39 = arith.constant 0 : i32
        %c0_i32_40 = arith.constant 0 : i32
        %71 = tpu.memref_slice %arg6[%9, %c0_i32_39, %c0_i32_40] : memref<2x137x128xf32, #tpu.memory_space<vmem>> -> memref<1x136x128xf32, #tpu.memory_space<vmem>>
        %72 = tpu.memref_squeeze %71 : memref<1x136x128xf32, #tpu.memory_space<vmem>> -> memref<136x128xf32, #tpu.memory_space<vmem>>
        %73 = tpu.memref_slice %arg7[%9] : memref<2x!tpu.dma_semaphore, #tpu.memory_space<semaphore_mem>> -> memref<1x!tpu.dma_semaphore, #tpu.memory_space<semaphore_mem>>
        %74 = tpu.memref_squeeze %73 : memref<1x!tpu.dma_semaphore, #tpu.memory_space<semaphore_mem>> -> memref<!tpu.dma_semaphore, #tpu.memory_space<semaphore_mem>>
        tpu.wait_dma2 semaphore(%74 : memref<!tpu.dma_semaphore, #tpu.memory_space<semaphore_mem>>) src(%70 : memref<136x128xf32, #tpu.memory_space<any>>) dst(%72 : memref<136x128xf32, #tpu.memory_space<vmem>>)
      } else {
      }
      %c0_i32_26 = arith.constant 0 : i32
      %51 = arith.cmpi sgt, %arg1, %c0_i32_26 : i32
      %c3_i32_27 = arith.constant 3 : i32
      %52 = arith.cmpi slt, %arg1, %c3_i32_27 : i32
      %53 = arith.andi %51, %52 : i1
      %54 = arith.extui %53 : i1 to i32
      %c0_i32_28 = arith.constant 0 : i32
      %55 = arith.cmpi ne, %54, %c0_i32_28 : i32
      scf.if %55 {
        %c128_i32 = arith.constant 128 : i32
        %69 = arith.muli %arg1, %c128_i32 : i32
        %c8_i32 = arith.constant 8 : i32
        %70 = arith.subi %69, %c8_i32 : i32
        %71 = tpu.assume_multiple %70, 8 : i32
        %c0_i32_38 = arith.constant 0 : i32
        %72 = tpu.memref_slice %arg2[%arg0, %71, %c0_i32_38] : memref<2x512x128xf32, #tpu.memory_space<any>> -> memref<1x137x128xf32, #tpu.memory_space<any>>
        %73 = tpu.memref_squeeze %72 : memref<1x137x128xf32, #tpu.memory_space<any>> -> memref<137x128xf32, #tpu.memory_space<any>>
        %c0_i32_39 = arith.constant 0 : i32
        %c0_i32_40 = arith.constant 0 : i32
        %74 = tpu.memref_slice %arg6[%9, %c0_i32_39, %c0_i32_40] : memref<2x137x128xf32, #tpu.memory_space<vmem>> -> memref<1x137x128xf32, #tpu.memory_space<vmem>>
        %75 = tpu.memref_squeeze %74 : memref<1x137x128xf32, #tpu.memory_space<vmem>> -> memref<137x128xf32, #tpu.memory_space<vmem>>
        %76 = tpu.memref_slice %arg7[%9] : memref<2x!tpu.dma_semaphore, #tpu.memory_space<semaphore_mem>> -> memref<1x!tpu.dma_semaphore, #tpu.memory_space<semaphore_mem>>
        %77 = tpu.memref_squeeze %76 : memref<1x!tpu.dma_semaphore, #tpu.memory_space<semaphore_mem>> -> memref<!tpu.dma_semaphore, #tpu.memory_space<semaphore_mem>>
        tpu.wait_dma2 semaphore(%77 : memref<!tpu.dma_semaphore, #tpu.memory_space<semaphore_mem>>) src(%73 : memref<137x128xf32, #tpu.memory_space<any>>) dst(%75 : memref<137x128xf32, #tpu.memory_space<vmem>>)
      } else {
      }
      %c1_i32_29 = arith.constant 1 : i32
      %56 = arith.addi %arg1, %c1_i32_29 : i32
      %c1_i32_30 = arith.constant 1 : i32
      %57 = arith.subi %c1_i32_30, %9 : i32
      %c0_i32_31 = arith.constant 0 : i32
      %58 = arith.cmpi eq, %56, %c0_i32_31 : i32
      %59 = arith.extui %58 : i1 to i32
      %c0_i32_32 = arith.constant 0 : i32
      %60 = arith.cmpi ne, %59, %c0_i32_32 : i32
      scf.if %60 {
        %cst_38 = arith.constant 0.000000e+00 : f32
        %69 = vector.broadcast %cst_38 : f32 to vector<8x128xf32>
        %70 = arith.index_cast %57 : i32 to index
        %c0_39 = arith.constant 0 : index
        %c0_40 = arith.constant 0 : index
        %71 = vector.load %arg6[%70, %c0_39, %c0_40] : memref<2x137x128xf32, #tpu.memory_space<vmem>>, vector<1x8x128xf32>
        %72 = vector.shape_cast %71 : vector<1x8x128xf32> to vector<8x128xf32>
        %73 = vector.shape_cast %69 : vector<8x128xf32> to vector<1x8x128xf32>
        tpu.vector_store %arg6[%70, %c0_39, %c0_40], %73 {strides = array<i32>} : memref<2x137x128xf32, #tpu.memory_space<vmem>>, vector<1x8x128xf32>,
        %c0_i32_41 = arith.constant 0 : i32
        %c0_i32_42 = arith.constant 0 : i32
        %74 = tpu.memref_slice %arg2[%arg0, %c0_i32_41, %c0_i32_42] : memref<2x512x128xf32, #tpu.memory_space<any>> -> memref<1x129x128xf32, #tpu.memory_space<any>>
        %75 = tpu.memref_squeeze %74 : memref<1x129x128xf32, #tpu.memory_space<any>> -> memref<129x128xf32, #tpu.memory_space<any>>
        %c8_i32 = arith.constant 8 : i32
        %c0_i32_43 = arith.constant 0 : i32
        %76 = tpu.memref_slice %arg6[%57, %c8_i32, %c0_i32_43] : memref<2x137x128xf32, #tpu.memory_space<vmem>> -> memref<1x129x128xf32, #tpu.memory_space<vmem>>
        %77 = tpu.memref_squeeze %76 : memref<1x129x128xf32, #tpu.memory_space<vmem>> -> memref<129x128xf32, #tpu.memory_space<vmem>>
        %78 = tpu.memref_slice %arg7[%57] : memref<2x!tpu.dma_semaphore, #tpu.memory_space<semaphore_mem>> -> memref<1x!tpu.dma_semaphore, #tpu.memory_space<semaphore_mem>>
        %79 = tpu.memref_squeeze %78 : memref<1x!tpu.dma_semaphore, #tpu.memory_space<semaphore_mem>> -> memref<!tpu.dma_semaphore, #tpu.memory_space<semaphore_mem>>
        tpu.enqueue_dma source(%75 : memref<129x128xf32, #tpu.memory_space<any>>) target(%77 : memref<129x128xf32, #tpu.memory_space<vmem>>) target_semaphore(%79 : memref<!tpu.dma_semaphore, #tpu.memory_space<semaphore_mem>>)
      } else {
      }
      %c3_i32_33 = arith.constant 3 : i32
      %61 = arith.cmpi eq, %56, %c3_i32_33 : i32
      %62 = arith.extui %61 : i1 to i32
      %c0_i32_34 = arith.constant 0 : i32
      %63 = arith.cmpi ne, %62, %c0_i32_34 : i32
      scf.if %63 {
        %cst_38 = arith.constant 0.000000e+00 : f32
        %69 = vector.broadcast %cst_38 : f32 to vector<1x128xf32>
        %70 = arith.index_cast %57 : i32 to index
        %c136 = arith.constant 136 : index
        %c0_39 = arith.constant 0 : index
        %71 = vector.load %arg6[%70, %c136, %c0_39] : memref<2x137x128xf32, #tpu.memory_space<vmem>>, vector<1x1x128xf32>
        %72 = vector.shape_cast %71 : vector<1x1x128xf32> to vector<1x128xf32>
        %73 = vector.shape_cast %69 : vector<1x128xf32> to vector<1x1x128xf32>
        tpu.vector_store %arg6[%70, %c136, %c0_39], %73 {strides = array<i32>} : memref<2x137x128xf32, #tpu.memory_space<vmem>>, vector<1x1x128xf32>,
        %c376_i32 = arith.constant 376 : i32
        %c0_i32_40 = arith.constant 0 : i32
        %74 = tpu.memref_slice %arg2[%arg0, %c376_i32, %c0_i32_40] : memref<2x512x128xf32, #tpu.memory_space<any>> -> memref<1x136x128xf32, #tpu.memory_space<any>>
        %75 = tpu.memref_squeeze %74 : memref<1x136x128xf32, #tpu.memory_space<any>> -> memref<136x128xf32, #tpu.memory_space<any>>
        %c0_i32_41 = arith.constant 0 : i32
        %c0_i32_42 = arith.constant 0 : i32
        %76 = tpu.memref_slice %arg6[%57, %c0_i32_41, %c0_i32_42] : memref<2x137x128xf32, #tpu.memory_space<vmem>> -> memref<1x136x128xf32, #tpu.memory_space<vmem>>
        %77 = tpu.memref_squeeze %76 : memref<1x136x128xf32, #tpu.memory_space<vmem>> -> memref<136x128xf32, #tpu.memory_space<vmem>>
        %78 = tpu.memref_slice %arg7[%57] : memref<2x!tpu.dma_semaphore, #tpu.memory_space<semaphore_mem>> -> memref<1x!tpu.dma_semaphore, #tpu.memory_space<semaphore_mem>>
        %79 = tpu.memref_squeeze %78 : memref<1x!tpu.dma_semaphore, #tpu.memory_space<semaphore_mem>> -> memref<!tpu.dma_semaphore, #tpu.memory_space<semaphore_mem>>
        tpu.enqueue_dma source(%75 : memref<136x128xf32, #tpu.memory_space<any>>) target(%77 : memref<136x128xf32, #tpu.memory_space<vmem>>) target_semaphore(%79 : memref<!tpu.dma_semaphore, #tpu.memory_space<semaphore_mem>>)
      } else {
      }
      %c0_i32_35 = arith.constant 0 : i32
      %64 = arith.cmpi sgt, %56, %c0_i32_35 : i32
      %c3_i32_36 = arith.constant 3 : i32
      %65 = arith.cmpi slt, %56, %c3_i32_36 : i32
      %66 = arith.andi %64, %65 : i1
      %67 = arith.extui %66 : i1 to i32
      %c0_i32_37 = arith.constant 0 : i32
      %68 = arith.cmpi ne, %67, %c0_i32_37 : i32
      scf.if %68 {
        %c128_i32 = arith.constant 128 : i32
        %69 = arith.muli %56, %c128_i32 : i32
        %c8_i32 = arith.constant 8 : i32
        %70 = arith.subi %69, %c8_i32 : i32
        %71 = tpu.assume_multiple %70, 8 : i32
        %c0_i32_38 = arith.constant 0 : i32
        %72 = tpu.memref_slice %arg2[%arg0, %71, %c0_i32_38] : memref<2x512x128xf32, #tpu.memory_space<any>> -> memref<1x137x128xf32, #tpu.memory_space<any>>
        %73 = tpu.memref_squeeze %72 : memref<1x137x128xf32, #tpu.memory_space<any>> -> memref<137x128xf32, #tpu.memory_space<any>>
        %c0_i32_39 = arith.constant 0 : i32
        %c0_i32_40 = arith.constant 0 : i32
        %74 = tpu.memref_slice %arg6[%57, %c0_i32_39, %c0_i32_40] : memref<2x137x128xf32, #tpu.memory_space<vmem>> -> memref<1x137x128xf32, #tpu.memory_space<vmem>>
        %75 = tpu.memref_squeeze %74 : memref<1x137x128xf32, #tpu.memory_space<vmem>> -> memref<137x128xf32, #tpu.memory_space<vmem>>
        %76 = tpu.memref_slice %arg7[%57] : memref<2x!tpu.dma_semaphore, #tpu.memory_space<semaphore_mem>> -> memref<1x!tpu.dma_semaphore, #tpu.memory_space<semaphore_mem>>
        %77 = tpu.memref_squeeze %76 : memref<1x!tpu.dma_semaphore, #tpu.memory_space<semaphore_mem>> -> memref<!tpu.dma_semaphore, #tpu.memory_space<semaphore_mem>>
        tpu.enqueue_dma source(%73 : memref<137x128xf32, #tpu.memory_space<any>>) target(%75 : memref<137x128xf32, #tpu.memory_space<vmem>>) target_semaphore(%77 : memref<!tpu.dma_semaphore, #tpu.memory_space<semaphore_mem>>)
      } else {
      }
    } else {
    }
    %c0_i32_5 = arith.constant 0 : i32
    %13 = arith.cmpi sgt, %arg1, %c0_i32_5 : i32
    %14 = arith.extui %13 : i1 to i32
    %c0_i32_6 = arith.constant 0 : i32
    %15 = arith.cmpi ne, %14, %c0_i32_6 : i32
    scf.if %15 {
      %c0_i32_16 = arith.constant 0 : i32
      %34 = arith.cmpi eq, %arg1, %c0_i32_16 : i32
      %35 = arith.extui %34 : i1 to i32
      %c0_i32_17 = arith.constant 0 : i32
      %36 = arith.cmpi ne, %35, %c0_i32_17 : i32
      scf.if %36 {
        %c0_i32_24 = arith.constant 0 : i32
        %c0_i32_25 = arith.constant 0 : i32
        %48 = tpu.memref_slice %arg2[%arg0, %c0_i32_24, %c0_i32_25] : memref<2x512x128xf32, #tpu.memory_space<any>> -> memref<1x129x128xf32, #tpu.memory_space<any>>
        %49 = tpu.memref_squeeze %48 : memref<1x129x128xf32, #tpu.memory_space<any>> -> memref<129x128xf32, #tpu.memory_space<any>>
        %c8_i32 = arith.constant 8 : i32
        %c0_i32_26 = arith.constant 0 : i32
        %50 = tpu.memref_slice %arg6[%9, %c8_i32, %c0_i32_26] : memref<2x137x128xf32, #tpu.memory_space<vmem>> -> memref<1x129x128xf32, #tpu.memory_space<vmem>>
        %51 = tpu.memref_squeeze %50 : memref<1x129x128xf32, #tpu.memory_space<vmem>> -> memref<129x128xf32, #tpu.memory_space<vmem>>
        %52 = tpu.memref_slice %arg7[%9] : memref<2x!tpu.dma_semaphore, #tpu.memory_space<semaphore_mem>> -> memref<1x!tpu.dma_semaphore, #tpu.memory_space<semaphore_mem>>
        %53 = tpu.memref_squeeze %52 : memref<1x!tpu.dma_semaphore, #tpu.memory_space<semaphore_mem>> -> memref<!tpu.dma_semaphore, #tpu.memory_space<semaphore_mem>>
        tpu.wait_dma2 semaphore(%53 : memref<!tpu.dma_semaphore, #tpu.memory_space<semaphore_mem>>) src(%49 : memref<129x128xf32, #tpu.memory_space<any>>) dst(%51 : memref<129x128xf32, #tpu.memory_space<vmem>>)
      } else {
      }
      %c3_i32 = arith.constant 3 : i32
      %37 = arith.cmpi eq, %arg1, %c3_i32 : i32
      %38 = arith.extui %37 : i1 to i32
      %c0_i32_18 = arith.constant 0 : i32
      %39 = arith.cmpi ne, %38, %c0_i32_18 : i32
      scf.if %39 {
        %c376_i32 = arith.constant 376 : i32
        %c0_i32_24 = arith.constant 0 : i32
        %48 = tpu.memref_slice %arg2[%arg0, %c376_i32, %c0_i32_24] : memref<2x512x128xf32, #tpu.memory_space<any>> -> memref<1x136x128xf32, #tpu.memory_space<any>>
        %49 = tpu.memref_squeeze %48 : memref<1x136x128xf32, #tpu.memory_space<any>> -> memref<136x128xf32, #tpu.memory_space<any>>
        %c0_i32_25 = arith.constant 0 : i32
        %c0_i32_26 = arith.constant 0 : i32
        %50 = tpu.memref_slice %arg6[%9, %c0_i32_25, %c0_i32_26] : memref<2x137x128xf32, #tpu.memory_space<vmem>> -> memref<1x136x128xf32, #tpu.memory_space<vmem>>
        %51 = tpu.memref_squeeze %50 : memref<1x136x128xf32, #tpu.memory_space<vmem>> -> memref<136x128xf32, #tpu.memory_space<vmem>>
        %52 = tpu.memref_slice %arg7[%9] : memref<2x!tpu.dma_semaphore, #tpu.memory_space<semaphore_mem>> -> memref<1x!tpu.dma_semaphore, #tpu.memory_space<semaphore_mem>>
        %53 = tpu.memref_squeeze %52 : memref<1x!tpu.dma_semaphore, #tpu.memory_space<semaphore_mem>> -> memref<!tpu.dma_semaphore, #tpu.memory_space<semaphore_mem>>
        tpu.wait_dma2 semaphore(%53 : memref<!tpu.dma_semaphore, #tpu.memory_space<semaphore_mem>>) src(%49 : memref<136x128xf32, #tpu.memory_space<any>>) dst(%51 : memref<136x128xf32, #tpu.memory_space<vmem>>)
      } else {
      }
      %c0_i32_19 = arith.constant 0 : i32
      %40 = arith.cmpi sgt, %arg1, %c0_i32_19 : i32
      %c3_i32_20 = arith.constant 3 : i32
      %41 = arith.cmpi slt, %arg1, %c3_i32_20 : i32
      %42 = arith.andi %40, %41 : i1
      %43 = arith.extui %42 : i1 to i32
      %c0_i32_21 = arith.constant 0 : i32
      %44 = arith.cmpi ne, %43, %c0_i32_21 : i32
      scf.if %44 {
        %c128_i32 = arith.constant 128 : i32
        %48 = arith.muli %arg1, %c128_i32 : i32
        %c8_i32 = arith.constant 8 : i32
        %49 = arith.subi %48, %c8_i32 : i32
        %50 = tpu.assume_multiple %49, 8 : i32
        %c0_i32_24 = arith.constant 0 : i32
        %51 = tpu.memref_slice %arg2[%arg0, %50, %c0_i32_24] : memref<2x512x128xf32, #tpu.memory_space<any>> -> memref<1x137x128xf32, #tpu.memory_space<any>>
        %52 = tpu.memref_squeeze %51 : memref<1x137x128xf32, #tpu.memory_space<any>> -> memref<137x128xf32, #tpu.memory_space<any>>
        %c0_i32_25 = arith.constant 0 : i32
        %c0_i32_26 = arith.constant 0 : i32
        %53 = tpu.memref_slice %arg6[%9, %c0_i32_25, %c0_i32_26] : memref<2x137x128xf32, #tpu.memory_space<vmem>> -> memref<1x137x128xf32, #tpu.memory_space<vmem>>
        %54 = tpu.memref_squeeze %53 : memref<1x137x128xf32, #tpu.memory_space<vmem>> -> memref<137x128xf32, #tpu.memory_space<vmem>>
        %55 = tpu.memref_slice %arg7[%9] : memref<2x!tpu.dma_semaphore, #tpu.memory_space<semaphore_mem>> -> memref<1x!tpu.dma_semaphore, #tpu.memory_space<semaphore_mem>>
        %56 = tpu.memref_squeeze %55 : memref<1x!tpu.dma_semaphore, #tpu.memory_space<semaphore_mem>> -> memref<!tpu.dma_semaphore, #tpu.memory_space<semaphore_mem>>
        tpu.wait_dma2 semaphore(%56 : memref<!tpu.dma_semaphore, #tpu.memory_space<semaphore_mem>>) src(%52 : memref<137x128xf32, #tpu.memory_space<any>>) dst(%54 : memref<137x128xf32, #tpu.memory_space<vmem>>)
      } else {
      }
      %c3_i32_22 = arith.constant 3 : i32
      %45 = arith.cmpi slt, %arg1, %c3_i32_22 : i32
      %46 = arith.extui %45 : i1 to i32
      %c0_i32_23 = arith.constant 0 : i32
      %47 = arith.cmpi ne, %46, %c0_i32_23 : i32
      scf.if %47 {
        %c1_i32_24 = arith.constant 1 : i32
        %48 = arith.addi %arg1, %c1_i32_24 : i32
        %c1_i32_25 = arith.constant 1 : i32
        %49 = arith.subi %c1_i32_25, %9 : i32
        %c0_i32_26 = arith.constant 0 : i32
        %50 = arith.cmpi eq, %48, %c0_i32_26 : i32
        %51 = arith.extui %50 : i1 to i32
        %c0_i32_27 = arith.constant 0 : i32
        %52 = arith.cmpi ne, %51, %c0_i32_27 : i32
        scf.if %52 {
          %cst_33 = arith.constant 0.000000e+00 : f32
          %61 = vector.broadcast %cst_33 : f32 to vector<8x128xf32>
          %62 = arith.index_cast %49 : i32 to index
          %c0_34 = arith.constant 0 : index
          %c0_35 = arith.constant 0 : index
          %63 = vector.load %arg6[%62, %c0_34, %c0_35] : memref<2x137x128xf32, #tpu.memory_space<vmem>>, vector<1x8x128xf32>
          %64 = vector.shape_cast %63 : vector<1x8x128xf32> to vector<8x128xf32>
          %65 = vector.shape_cast %61 : vector<8x128xf32> to vector<1x8x128xf32>
          tpu.vector_store %arg6[%62, %c0_34, %c0_35], %65 {strides = array<i32>} : memref<2x137x128xf32, #tpu.memory_space<vmem>>, vector<1x8x128xf32>,
          %c0_i32_36 = arith.constant 0 : i32
          %c0_i32_37 = arith.constant 0 : i32
          %66 = tpu.memref_slice %arg2[%arg0, %c0_i32_36, %c0_i32_37] : memref<2x512x128xf32, #tpu.memory_space<any>> -> memref<1x129x128xf32, #tpu.memory_space<any>>
          %67 = tpu.memref_squeeze %66 : memref<1x129x128xf32, #tpu.memory_space<any>> -> memref<129x128xf32, #tpu.memory_space<any>>
          %c8_i32 = arith.constant 8 : i32
          %c0_i32_38 = arith.constant 0 : i32
          %68 = tpu.memref_slice %arg6[%49, %c8_i32, %c0_i32_38] : memref<2x137x128xf32, #tpu.memory_space<vmem>> -> memref<1x129x128xf32, #tpu.memory_space<vmem>>
          %69 = tpu.memref_squeeze %68 : memref<1x129x128xf32, #tpu.memory_space<vmem>> -> memref<129x128xf32, #tpu.memory_space<vmem>>
          %70 = tpu.memref_slice %arg7[%49] : memref<2x!tpu.dma_semaphore, #tpu.memory_space<semaphore_mem>> -> memref<1x!tpu.dma_semaphore, #tpu.memory_space<semaphore_mem>>
          %71 = tpu.memref_squeeze %70 : memref<1x!tpu.dma_semaphore, #tpu.memory_space<semaphore_mem>> -> memref<!tpu.dma_semaphore, #tpu.memory_space<semaphore_mem>>
          tpu.enqueue_dma source(%67 : memref<129x128xf32, #tpu.memory_space<any>>) target(%69 : memref<129x128xf32, #tpu.memory_space<vmem>>) target_semaphore(%71 : memref<!tpu.dma_semaphore, #tpu.memory_space<semaphore_mem>>)
        } else {
        }
        %c3_i32_28 = arith.constant 3 : i32
        %53 = arith.cmpi eq, %48, %c3_i32_28 : i32
        %54 = arith.extui %53 : i1 to i32
        %c0_i32_29 = arith.constant 0 : i32
        %55 = arith.cmpi ne, %54, %c0_i32_29 : i32
        scf.if %55 {
          %cst_33 = arith.constant 0.000000e+00 : f32
          %61 = vector.broadcast %cst_33 : f32 to vector<1x128xf32>
          %62 = arith.index_cast %49 : i32 to index
          %c136 = arith.constant 136 : index
          %c0_34 = arith.constant 0 : index
          %63 = vector.load %arg6[%62, %c136, %c0_34] : memref<2x137x128xf32, #tpu.memory_space<vmem>>, vector<1x1x128xf32>
          %64 = vector.shape_cast %63 : vector<1x1x128xf32> to vector<1x128xf32>
          %65 = vector.shape_cast %61 : vector<1x128xf32> to vector<1x1x128xf32>
          tpu.vector_store %arg6[%62, %c136, %c0_34], %65 {strides = array<i32>} : memref<2x137x128xf32, #tpu.memory_space<vmem>>, vector<1x1x128xf32>,
          %c376_i32 = arith.constant 376 : i32
          %c0_i32_35 = arith.constant 0 : i32
          %66 = tpu.memref_slice %arg2[%arg0, %c376_i32, %c0_i32_35] : memref<2x512x128xf32, #tpu.memory_space<any>> -> memref<1x136x128xf32, #tpu.memory_space<any>>
          %67 = tpu.memref_squeeze %66 : memref<1x136x128xf32, #tpu.memory_space<any>> -> memref<136x128xf32, #tpu.memory_space<any>>
          %c0_i32_36 = arith.constant 0 : i32
          %c0_i32_37 = arith.constant 0 : i32
          %68 = tpu.memref_slice %arg6[%49, %c0_i32_36, %c0_i32_37] : memref<2x137x128xf32, #tpu.memory_space<vmem>> -> memref<1x136x128xf32, #tpu.memory_space<vmem>>
          %69 = tpu.memref_squeeze %68 : memref<1x136x128xf32, #tpu.memory_space<vmem>> -> memref<136x128xf32, #tpu.memory_space<vmem>>
          %70 = tpu.memref_slice %arg7[%49] : memref<2x!tpu.dma_semaphore, #tpu.memory_space<semaphore_mem>> -> memref<1x!tpu.dma_semaphore, #tpu.memory_space<semaphore_mem>>
          %71 = tpu.memref_squeeze %70 : memref<1x!tpu.dma_semaphore, #tpu.memory_space<semaphore_mem>> -> memref<!tpu.dma_semaphore, #tpu.memory_space<semaphore_mem>>
          tpu.enqueue_dma source(%67 : memref<136x128xf32, #tpu.memory_space<any>>) target(%69 : memref<136x128xf32, #tpu.memory_space<vmem>>) target_semaphore(%71 : memref<!tpu.dma_semaphore, #tpu.memory_space<semaphore_mem>>)
        } else {
        }
        %c0_i32_30 = arith.constant 0 : i32
        %56 = arith.cmpi sgt, %48, %c0_i32_30 : i32
        %c3_i32_31 = arith.constant 3 : i32
        %57 = arith.cmpi slt, %48, %c3_i32_31 : i32
        %58 = arith.andi %56, %57 : i1
        %59 = arith.extui %58 : i1 to i32
        %c0_i32_32 = arith.constant 0 : i32
        %60 = arith.cmpi ne, %59, %c0_i32_32 : i32
        scf.if %60 {
          %c128_i32 = arith.constant 128 : i32
          %61 = arith.muli %48, %c128_i32 : i32
          %c8_i32 = arith.constant 8 : i32
          %62 = arith.subi %61, %c8_i32 : i32
          %63 = tpu.assume_multiple %62, 8 : i32
          %c0_i32_33 = arith.constant 0 : i32
          %64 = tpu.memref_slice %arg2[%arg0, %63, %c0_i32_33] : memref<2x512x128xf32, #tpu.memory_space<any>> -> memref<1x137x128xf32, #tpu.memory_space<any>>
          %65 = tpu.memref_squeeze %64 : memref<1x137x128xf32, #tpu.memory_space<any>> -> memref<137x128xf32, #tpu.memory_space<any>>
          %c0_i32_34 = arith.constant 0 : i32
          %c0_i32_35 = arith.constant 0 : i32
          %66 = tpu.memref_slice %arg6[%49, %c0_i32_34, %c0_i32_35] : memref<2x137x128xf32, #tpu.memory_space<vmem>> -> memref<1x137x128xf32, #tpu.memory_space<vmem>>
          %67 = tpu.memref_squeeze %66 : memref<1x137x128xf32, #tpu.memory_space<vmem>> -> memref<137x128xf32, #tpu.memory_space<vmem>>
          %68 = tpu.memref_slice %arg7[%49] : memref<2x!tpu.dma_semaphore, #tpu.memory_space<semaphore_mem>> -> memref<1x!tpu.dma_semaphore, #tpu.memory_space<semaphore_mem>>
          %69 = tpu.memref_squeeze %68 : memref<1x!tpu.dma_semaphore, #tpu.memory_space<semaphore_mem>> -> memref<!tpu.dma_semaphore, #tpu.memory_space<semaphore_mem>>
          tpu.enqueue_dma source(%65 : memref<137x128xf32, #tpu.memory_space<any>>) target(%67 : memref<137x128xf32, #tpu.memory_space<vmem>>) target_semaphore(%69 : memref<!tpu.dma_semaphore, #tpu.memory_space<semaphore_mem>>)
        } else {
        }
      } else {
      }
    } else {
    }
    %16 = arith.index_cast %9 : i32 to index
    %c7 = arith.constant 7 : index
    %c0 = arith.constant 0 : index
    %17 = vector.load %arg6[%16, %c7, %c0] : memref<2x137x128xf32, #tpu.memory_space<vmem>>, vector<1x128x128xf32>
    %18 = vector.shape_cast %17 : vector<1x128x128xf32> to vector<128x128xf32>
    %19 = arith.index_cast %9 : i32 to index
    %c8 = arith.constant 8 : index
    %c0_7 = arith.constant 0 : index
    %20 = vector.load %arg6[%19, %c8, %c0_7] : memref<2x137x128xf32, #tpu.memory_space<vmem>>, vector<1x128x128xf32>
    %21 = vector.shape_cast %20 : vector<1x128x128xf32> to vector<128x128xf32>
    %22 = arith.index_cast %9 : i32 to index
    %c9 = arith.constant 9 : index
    %c0_8 = arith.constant 0 : index
    %23 = vector.load %arg6[%22, %c9, %c0_8] : memref<2x137x128xf32, #tpu.memory_space<vmem>>, vector<1x128x128xf32>
    %24 = vector.shape_cast %23 : vector<1x128x128xf32> to vector<128x128xf32>
    %25 = tpu.concatenate %18, %21, %24 in 1 : vector<128x128xf32>, vector<128x128xf32>, vector<128x128xf32> -> vector<128x384xf32>
    %c0_9 = arith.constant 0 : index
    %c0_10 = arith.constant 0 : index
    %26 = vector.load %arg3[%c0_9, %c0_10] : memref<384x128xf32, #tpu.memory_space<vmem>>, vector<384x128xf32>
    %cst = arith.constant dense<0.000000e+00> : vector<128x128xf32>
    %27 = tpu.matmul %25, %26, %cst {dimension_numbers = #tpu.dot_dimension_numbers<[1], [0], [0], [1], [0, 0, 1, 1], [], []>} : vector<128x384xf32>, vector<384x128xf32>, vector<128x128xf32> -> vector<128x128xf32>
    %c0_11 = arith.constant 0 : index
    %c0_12 = arith.constant 0 : index
    %28 = vector.load %arg4[%c0_11, %c0_12] : memref<1x128xf32, #tpu.memory_space<vmem>>, vector<1x128xf32>
    %29 = vector.broadcast %28 : vector<1x128xf32> to vector<128x128xf32>
    %30 = arith.addf %27, %29 : vector<128x128xf32>
    %c0_13 = arith.constant 0 : index
    %c0_14 = arith.constant 0 : index
    %c0_15 = arith.constant 0 : index
    %31 = vector.load %arg5[%c0_13, %c0_14, %c0_15] : memref<1x128x128xf32, #tpu.memory_space<vmem>>, vector<1x128x128xf32>
    %32 = vector.shape_cast %31 : vector<1x128x128xf32> to vector<128x128xf32>
    %33 = vector.shape_cast %30 : vector<128x128xf32> to vector<1x128x128xf32>
    tpu.vector_store %arg5[%c0_13, %c0_14, %c0_15], %33 {strides = array<i32>} : memref<1x128x128xf32, #tpu.memory_space<vmem>>, vector<1x128x128xf32>,
    return
  }
  func.func @transform_1(%arg0: i32, %arg1: i32) -> (i32, i32) {
    %c0_i32 = arith.constant 0 : i32
    %c0_i32_0 = arith.constant 0 : i32
    %c0_i32_1 = arith.constant 0 : i32
    return %c0_i32, %c0_i32_0 : i32, i32
  }
  func.func @transform_2(%arg0: i32, %arg1: i32) -> (i32, i32) {
    %c0_i32 = arith.constant 0 : i32
    %c0_i32_0 = arith.constant 0 : i32
    %c0_i32_1 = arith.constant 0 : i32
    return %c0_i32, %c0_i32_0 : i32, i32
  }
  func.func @transform_3(%arg0: i32, %arg1: i32) -> (i32, i32, i32) {
    %c0_i32 = arith.constant 0 : i32
    %c0_i32_0 = arith.constant 0 : i32
    return %arg0, %arg1, %c0_i32 : i32, i32, i32
  }
}

</mosaic_0001>

<bundles_post_ra>
// kernel: tpu_custom_call.1
= control target key start
LH: loop header
LB: loop body
LE: loop exit
PB: predicated region body
PF: predicated region fallthrough
CT: control target
= control target key end

     0   :  { %s2134_s0 = inlined_call_operand.hbm [shape: f32[2,512,128], index: 0, kind: input, shape index: {}]   ;;  %s2135_s1 = inlined_call_operand.hbm [shape: f32[384,128], index: 1, kind: input, shape index: {}]   ;;  %s2136_s2 = inlined_call_operand.vmem [shape: f32[1,128], index: 2, kind: input, shape index: {}]   ;;  %s2137_s3 = inlined_call_operand.hbm [shape: f32[2,512,128], index: 3, kind: output, shape index: {}]  }
   0x1   :  { %2151 = sst [smem:[#allocation43_spill]] %s2135_s1 }
   0x2   :  { %8 = vsyncpa [#allocation5], 0 }
   0x3   :  { %9 = vsyncpa [#allocation6], 0 }
   0x4   :  { %11 = vsyncpa [#allocation6 + $0x1], 0  ;;  %s1531_s12 = smov 0   ;;  %s1533_s13 = smov 0  }
   0x5   :  { %s1535_s14 = smov 0   ;;  %s1537_s15 = smov 0  }
   0x6   :  { %s1539_s16 = smov 0   ;;  %s1541_s17 = smov 0  }
   0x7   :  { %s1543_s18 = smov 0   ;;  %s1545_s19 = smov 0  }
   0x8 LB: > { %2152 = sst [smem:[#allocation36_spill]] %s1474_s14  ;;  %s909_s20 = sadd.s32 4294967295, %s1494_s19   ;;  %s1494_s19 = sphi %s1545_s19, %s17_s19   ;;  %s1490_s18 = sphi %s1543_s18, %s2183_s18   ;;  %s1486_s17 = sphi %s1541_s17, %s2182_s17   ;;  %s1482_s16 = sphi %s1539_s16, %s2181_s16   ;;  %s1478_s15 = sphi %s1537_s15, %s2180_s15   ;;  %s1474_s14 = sphi %s1535_s14, %s2179_s14   ;;  %s1470_s13 = sphi %s1533_s13, %s2185_s13   ;;  %s1466_s12 = sphi %s1531_s12, %s2184_s12  }
   0x9   : > { %2153 = sst [smem:[#allocation37_spill]] %s1486_s17  ;;  %s910_s21 = sadd.s32 4294967294, %s1494_s19  }
   0xa   : > { %2154 = sst [smem:[#allocation38_spill]] %s1490_s18  ;;  %s26_s22 = sadd.s32 1, %s1486_s17 }
   0xb   : > { %s29_s23 = sadd.s32 1, %s1490_s18  ;;  %p27_p0 = scmp.ge.s32.totalorder %s26_s22, 4 }
   0xc   : > { %s80_s24 = sadd.s32 1, %s1474_s14  ;;  %p90_p1 = scmp.ne.s32.totalorder %s1474_s14, %s1470_s13 }
   0xd   : > { %p91_p2 = scmp.eq.s32.totalorder %s909_s20, 7  ;;  %s2187_s22 = smov (%p27_p0, %s26_s22), 0 }
   0xe   : > { %2155 = sst [smem:[#allocation39_spill]] %s2187_s22  ;;  %s2189_s23 = smov (!%p27_p0, %s29_s23), %s1490_s18 }
   0xf   : > { %s76_s25 = ssub.s32 %s1486_s17, %s2187_s22  ;;  %p1583_p3 = por %p91_p2, %p90_p1 }
  0x10   : > { %p31_p4 = scmp.ge.s32.totalorder %s2189_s23, 2  ;;  %p96_p5 = scmp.ne.s32.totalorder %s1470_s13, %s1466_s12 }
  0x11   : > { %s2156_s26 = scalar_select %p1583_p3, 1, 0 }
  0x12   : > { %p97_p6 = scmp.eq.s32.totalorder %s910_s21, 7  ;;  %p911_p7 = scmp.ge.s32.totalorder %s1494_s19, 1 }
  0x13   : > { %s2191_s23 = smov (%p31_p4, %s2189_s23), 0  ;;  %p104_p9 = scmp.lt.s32.totalorder %s1494_s19, 9 }
  0x14   : > { %2157 = sst [smem:[#allocation40_spill]] %s2191_s23  ;;  %p1592_p8 = por %p97_p6, %p96_p5 }
  0x15   : > { %s75_s28 = ssub.s32 %s1490_s18, %s2191_s23  ;;  %p1599_p10 = pnand %p911_p7, %p104_p9 }
  0x16   : > { %s2158_s27 = scalar_select %p1592_p8, 1, 0 }
  0x17   : > { %s77_s29 = sor.u32 %s76_s25, %s75_s28  ;;  %p1603_p12 = scmp.eq.s32.totalorder %s909_s20, 0 }
  0x18   : > { %2159 = sst [smem:[#allocation41_spill]] %s2158_s27  ;;  %p78_p11 = scmp.eq.s32.totalorder %s77_s29, 0 }
  0x19   : > { %p1022_p13 = pneg %p1599_p10  ;;  %s2162_s1 = sld [smem:[#allocation43_spill]] }
  0x1a   : > { %s1613_s8 = scalar_select %p78_p11, %s1474_s14, %s80_s24  }
  0x1b   : > { %s1496_s9 = smov [#allocation4]   ;;  %p1023_p0 = pnand %p1603_p12, %p1022_p13 }
  0x1c   : > { %2163 = sst [smem:[#allocation42_spill]] %s1613_s8  ;;  %s117_s10 = sshll.u32 %s1496_s9, 4  ;;  %s118_s10 = int_to_ptr.vmem [resolvable:$true] %s117_s10 }
  0x1d   : > { %s1497_s11 = smov 128   ;;  %s1498_s20 = smov 8  }
  0x1e   : > { %136 = sbr.rel (%p1599_p10) target bundleno = 566 (0x236), region = 28 }
  0x1f   : > { %s115_s7 = sshll.u32 %s2162_s1, 4  ;;  %s116_s7 = int_to_ptr.hbm [resolvable:$true] %s115_s7 }
  0x20   : > { %1025 = dma.hbm_to_vmem [thread:$0]  (!%p1023_p0), %s116_s7, 6144, %s118_s10, [#allocation5], %s1497_s11, %s1497_s11, %s1498_s20  }
  0x23   : > { %1437 = dma.done.wait (%p1603_p12), [#allocation5], 6144  }
  0x24   : > { %1439 = vsyncadd (%p1603_p12), [#allocation5], 4294961152  ;;  %s2138_s21 = sand.u32 1, %s1470_s13   ;;  %p155_p1 = scmp.lt.s32.totalorder %s1478_s15, 0 }
  0x25   : > { %s915_s24 = sshll.u32 %s2138_s21, 7  ;;  %s156_s25 = ssub.s32 0, %s1478_s15 }
  0x26   : > { %s916_s28 = smin.u32 %s1478_s15, %s156_s25  ;;  %s1631_s4 = scalar_lea.vmem [#allocation7], %s915_s24 }
  0x27   : > { %s158_s29 = sand.u32 1, %s916_s28   ;;  %p919_p4 = scmp.ne.s32.totalorder %s1478_s15, 0 }
  0x28   : > { %s159_s30 = ssub.s32 0, %s158_s29  ;;  %s1636_s7 = sshll.u32 (!%p919_p4), %s1482_s16, 9 }
  0x29   : > { %s2193_s30 = smov (!%p155_p1, %s159_s30), %s158_s29  ;;  %170 = sbr.rel (%p919_p4) target bundleno = 204 (0xcc), region = 36 }
  0x2a   : > { %p918_p2 = scmp.lt.s32.totalorder %s2193_s30, 0  ;;  %s165_s5 = sadd.s32 2, %s2193_s30 }
  0x2b   : > { %s1642_s11 = scalar_lea.hbm (!%p919_p4), %s2134_s0, %s1636_s7  ;;  %s1662_s1 = scalar_lea.hbm (!%p919_p4), %s2134_s0, 1024 }
  0x2c   : > { %s2195_s5 = smov (!%p918_p2, %s165_s5), %s2193_s30  ;;  %s186_s20 = sshll.u32 (!%p919_p4), %s1642_s11, 4  ;;  %s1649_s20 = int_to_ptr.hbm [resolvable:$true] %s186_s20 }
  0x2d   : > { %s171_s6 = smul.u32 (!%p919_p4), 144, %s2195_s5  ;;  %s1652_s29 = scalar_lea.sflag (!%p919_p4), [#allocation3], %s2195_s5 }
  0x2e   : > { %v1499_v0 = vmov 0.0   ;;  %s1142_s30 = sshra.s32 %s1649_s20, 4  ;;  %s1143_s30 = int_to_ptr.hbm [resolvable:$true] %s1142_s30 }
  0x2f   : > { %s1645_s25 = scalar_lea.vmem [#allocation2], %s171_s6  ;;  %s1144_s9 = scalar_lea.hbm %s1143_s30, 129 }
  0x30   : > { %173 = vst [vmem:[%s1645_s25] sm:$0xff] %v1499_v0  ;;  %s812_s24 = scalar_lea.vmem %s1645_s25, 8 [#allocation2]  ;;  %p1655_p5 = scmp.ne.s32.totalorder %s1143_s30, %s1144_s9 }
  0x31   : > { %s188_s28 = sshll.u32 %s812_s24, 4  ;;  %p1147_p6 = scmp.lt.s32.totalorder %s1143_s30, %s2134_s0  ;;  %s189_s28 = int_to_ptr.vmem [resolvable:$true] %s188_s28 }
  0x32   : > { %s2164_s10 = scalar_select %p1655_p5, 1, 0 }
  0x33   : > { %p1148_p7 = scmp.lt.s32.totalorder %s1662_s1, %s1144_s9 }
  0x35   : > { %p1668_p9 = por %p1148_p7, %p1147_p6 }
  0x37   : > { %s2165_s24 = scalar_select %p1668_p9, 1, 0 }
  0x38   : > { %p2143_p10 = pnand %p1668_p9, %p1655_p5 }
  0x3a   : > { %1153 = shalt.err (!%p2143_p10)  }
  0x3b   : > { %s1154_s21 = sshra.s32 %s189_s28, 4  ;;  %s1500_s22 = smov [#allocation2]   ;;  %s1155_s21 = int_to_ptr.vmem [resolvable:$true] %s1154_s21 }
  0x3c   : > { %s1156_s6 = scalar_lea.vmem %s1155_s21, 129  ;;  %s1681_s23 = scalar_lea.vmem %s1500_s22, 288 }
  0x3d   : > { %p1157_p11 = scmp.ne.s32.totalorder %s1155_s21, %s1156_s6  ;;  %p1159_p12 = scmp.lt.s32.totalorder %s1155_s21, [#allocation2] }
  0x3e   : > { %p1160_p13 = scmp.lt.s32.totalorder %s1681_s23, %s1156_s6 }
  0x40   : > { %p1161_p0 = por %p1160_p13, %p1159_p12 }
  0x42   : > { %p1162_p1 = pnand %p1161_p0, %p1157_p11 }
  0x44   : > { %1165 = shalt.err (!%p1162_p1)  }
  0x45   : > { %191 = dma.hbm_to_vmem [thread:$0]  %s1649_s20, 2064, %s189_s28, %s1652_s29 }
  0x46   : > { %p921_p2 = scmp.ne.s32.totalorder %s1478_s15, 3 }
  0x47   : > { %s816_s30 = scalar_lea.hbm (!%p921_p2), %s1642_s11, 376  ;;  %s208_s9 = sshll.u32 (!%p921_p2), %s1645_s25, 4  ;;  %s209_s9 = int_to_ptr.vmem [resolvable:$true] %s208_s9 }
  0x48   : > { %195 = sbr.rel (%p921_p2) target bundleno = 92 (0x5c), region = 44  ;;  %s206_s22 = sshll.u32 (!%p921_p2), %s816_s30, 4  ;;  %s207_s22 = int_to_ptr.hbm [resolvable:$true] %s206_s22 }
  0x49   : > { %s1166_s21 = sshra.s32 (!%p921_p2), %s207_s22, 4  ;;  %s1167_s21 = int_to_ptr.hbm [resolvable:$true] %s1166_s21 }
  0x4a   : > { %s1168_s6 = scalar_lea.hbm (!%p921_p2), %s1167_s21, 136  ;;  %p1171_p6 = scmp.lt.s32.totalorder (!%p921_p2), %s1167_s21, %s2134_s0 }
  0x4b   : > { %p1169_p4 = scmp.ne.s32.totalorder (!%p921_p2), %s1167_s21, %s1168_s6  ;;  %p1172_p7 = scmp.lt.s32.totalorder (!%p921_p2), %s1662_s1, %s1168_s6 }
  0x4d   : > { %v1501_v1 = vmov 0.0   ;;  %p1173_p11 = por %p1172_p7, %p1171_p6 }
  0x4e   : > { %196 = vst [vmem:[%s1645_s25 + $0x88] sm:$0x1] %v1501_v1 }
  0x4f   : > { %p1174_p12 = pnand %p1173_p11, %p1169_p4 }
  0x51   : > { %1177 = shalt.err (!%p1174_p12)  }
  0x52   : > { %s1178_s17 = sshra.s32 %s209_s9, 4  ;;  %s1179_s17 = int_to_ptr.vmem [resolvable:$true] %s1178_s17 }
  0x53   : > { %s1180_s8 = scalar_lea.vmem %s1179_s17, 136  ;;  %p1183_p0 = scmp.lt.s32.totalorder %s1179_s17, [#allocation2] }
  0x54   : > { %p1181_p13 = scmp.ne.s32.totalorder %s1179_s17, %s1180_s8  ;;  %p1184_p1 = scmp.lt.s32.totalorder %s1681_s23, %s1180_s8 }
  0x56   : > { %p1185_p2 = por %p1184_p1, %p1183_p0 }
  0x58   : > { %p1186_p10 = pnand %p1185_p2, %p1181_p13 }
  0x5a   : > { %1189 = shalt.err (!%p1186_p10)  }
  0x5b   : > { %211 = dma.hbm_to_vmem [thread:$0]  %s207_s22, 2176, %s209_s9, %s1652_s29 }
  0x5c PF: > { %p212_p4 = scmp.gt.s32.totalorder %s1478_s15, 0  ;;  %p213_p6 = scmp.lt.s32.totalorder %s1478_s15, 3 }
  0x5d   : > { %s2146_s18 = sshll.u32 %s1478_s15, 7  ;;  %s231_s30 = sshll.u32 %s1645_s25, 4  ;;  %s232_s30 = int_to_ptr.vmem [resolvable:$true] %s231_s30 }
  0x5e   : > { %p1700_p7 = pnand %p213_p6, %p212_p4  ;;  %s924_s8 = sadd.s32 4294967288, %s2146_s18 }
  0x5f   : > { %s220_s9 = sadd.s32 %s924_s8, %s1636_s7 }
  0x60   : > { %p1006_p10 = pneg %p1700_p7  ;;  %s221_s6 = scalar_lea.hbm %s2134_s0, %s220_s9 }
  0x61   : > { %s229_s28 = sshll.u32 %s221_s6, 4  ;;  %s230_s28 = int_to_ptr.hbm [resolvable:$true] %s229_s28 }
  0x62   : > { %s1190_s25 = sshra.s32 %s230_s28, 4  ;;  %s1191_s25 = int_to_ptr.hbm [resolvable:$true] %s1190_s25 }
  0x63   : > { %s1192_s14 = scalar_lea.hbm %s1191_s25, 137  ;;  %p1198_p0 = scmp.lt.s32.totalorder %s1191_s25, %s2134_s0 }
  0x64   : > { %p1193_p11 = scmp.ne.s32.totalorder %s1191_s25, %s1192_s14  ;;  %p1199_p1 = scmp.lt.s32.totalorder %s1662_s1, %s1192_s14 }
  0x66   : > { %p1195_p12 = pnand %p1193_p11, %p1006_p10  ;;  %p1200_p2 = por %p1199_p1, %p1198_p0 }
  0x68   : > { %p1196_p13 = pneg %p1195_p12 }
  0x6a   : > { %p1201_p4 = pnand %p1200_p2, %p1196_p13 }
  0x6c   : > { %1204 = shalt.err (!%p1201_p4)  }
  0x6d   : > { %s1205_s8 = sshra.s32 %s232_s30, 4  ;;  %s1206_s8 = int_to_ptr.vmem [resolvable:$true] %s1205_s8 }
  0x6e   : > { %s1207_s9 = scalar_lea.vmem %s1206_s8, 137  ;;  %p1213_p11 = scmp.lt.s32.totalorder %s1206_s8, [#allocation2] }
  0x6f   : > { %p1208_p6 = scmp.ne.s32.totalorder %s1206_s8, %s1207_s9  ;;  %p1214_p12 = scmp.lt.s32.totalorder %s1681_s23, %s1207_s9 }
  0x71   : > { %p1210_p8 = pnand %p1208_p6, %p1006_p10  ;;  %p1215_p5 = por %p1214_p12, %p1213_p11 }
  0x73   : > { %p1211_p3 = pneg %p1210_p8 }
  0x75   : > { %p1216_p9 = pnand %p1215_p5, %p1211_p3 }
  0x77   : > { %1219 = shalt.err (!%p1216_p9)  }
  0x78   : > { %1007 = dma.hbm_to_vmem [thread:$0]  (!%p1700_p7), %s230_s28, 2192, %s232_s30, %s1652_s29 }
  0x79   : > { %1440 = dma.done.wait %s1652_s29, 2064 }
  0x7a   : > { %1441 = vsyncadd %s1652_s29, 4294965232  ;;  %p1032_p13 = scmp.eq.s32.totalorder %s1478_s15, 3 }
  0x7c   : > { %1443 = dma.done.wait (%p1032_p13), %s1652_s29, 2176 }
  0x7d   : > { %1445 = vsyncadd (%p1032_p13), %s1652_s29, 4294965120 }
  0x7e   : > { %1447 = dma.done.wait (%p1006_p10), %s1652_s29, 2192 }
  0x7f   : > { %1449 = vsyncadd (%p1006_p10), %s1652_s29, 4294965104  ;;  %s1740_s14 = sadd.s32 1, %s1478_s15  ;;  %s1743_s27 = ssub.s32 1, %s2195_s5 }
  0x80   : > { %p926_p3 = scmp.ne.s32.totalorder %s1740_s14, 0 }
  0x81   : > { %s257_s18 = smul.u32 (!%p926_p3), 144, %s1743_s27  ;;  %s262_s29 = scalar_lea.sflag (!%p926_p3), [#allocation3], %s1743_s27 }
  0x82   : > { %256 = sbr.rel (%p926_p3) target bundleno = 148 (0x94), region = 68  ;;  %p2167_p8 = scmp.ne.s32.totalorder (!%p926_p3), %s2165_s24, 0 }
  0x83   : > { %s258_s30 = scalar_lea.vmem (!%p926_p3), [#allocation2], %s257_s18  ;;  %p2168_p5 = scmp.ne.s32.totalorder (!%p926_p3), %s2164_s10, 0 }
  0x84   : > { %s824_s17 = scalar_lea.vmem (!%p926_p3), %s258_s30, 8 [#allocation2] }
  0x85   : > { %s272_s22 = sshll.u32 (!%p926_p3), %s824_s17, 4  ;;  %p2169_p9 = pnand (!%p926_p3), %p2167_p8, %p2168_p5  ;;  %s273_s22 = int_to_ptr.vmem [resolvable:$true] %s272_s22 }
  0x87   : > { %v1502_v2 = vmov 0.0  }
  0x88   : > { %259 = vst [vmem:[%s258_s30] sm:$0xff] %v1502_v2 }
  0x89   : > { %1231 = shalt.err (!%p2169_p9)  }
  0x8a   : > { %s1232_s21 = sshra.s32 %s273_s22, 4  ;;  %s1233_s21 = int_to_ptr.vmem [resolvable:$true] %s1232_s21 }
  0x8b   : > { %s1234_s6 = scalar_lea.vmem %s1233_s21, 129  ;;  %p1237_p10 = scmp.lt.s32.totalorder %s1233_s21, [#allocation2] }
  0x8c   : > { %p1235_p7 = scmp.ne.s32.totalorder %s1233_s21, %s1234_s6  ;;  %p1238_p0 = scmp.lt.s32.totalorder %s1681_s23, %s1234_s6 }
  0x8e   : > { %p1239_p1 = por %p1238_p0, %p1237_p10 }
  0x90   : > { %p1240_p2 = pnand %p1239_p1, %p1235_p7 }
  0x92   : > { %1243 = shalt.err (!%p1240_p2)  }
  0x93   : > { %275 = dma.hbm_to_vmem [thread:$0]  %s1649_s20, 2064, %s273_s22, %s262_s29 }
  0x94 PF: > { %p927_p4 = scmp.ne.s32.totalorder %s1740_s14, 3 }
  0x95   : > { %s280_s10 = smul.u32 (!%p927_p4), 144, %s1743_s27  ;;  %s830_s24 = scalar_lea.hbm (!%p927_p4), %s1642_s11, 376 }
  0x96   : > { %279 = sbr.rel (%p927_p4) target bundleno = 171 (0xab), region = 76  ;;  %s293_s28 = sshll.u32 (!%p927_p4), %s830_s24, 4  ;;  %s294_s28 = int_to_ptr.hbm [resolvable:$true] %s293_s28 }
  0x97   : > { %s281_s25 = scalar_lea.vmem (!%p927_p4), [#allocation2], %s280_s10  ;;  %s285_s9 = scalar_lea.sflag (!%p927_p4), [#allocation3], %s1743_s27 }
  0x98   : > { %s295_s8 = sshll.u32 (!%p927_p4), %s281_s25, 4  ;;  %s1244_s18 = sshra.s32 (!%p927_p4), %s294_s28, 4  ;;  %s296_s8 = int_to_ptr.vmem [resolvable:$true] %s295_s8  ;;  %s1245_s18 = int_to_ptr.hbm [resolvable:$true] %s1244_s18 }
  0x99   : > { %s1246_s20 = scalar_lea.hbm (!%p927_p4), %s1245_s18, 136  ;;  %p1249_p11 = scmp.lt.s32.totalorder (!%p927_p4), %s1245_s18, %s2134_s0 }
  0x9a   : > { %p1247_p6 = scmp.ne.s32.totalorder (!%p927_p4), %s1245_s18, %s1246_s20  ;;  %p1250_p12 = scmp.lt.s32.totalorder (!%p927_p4), %s1662_s1, %s1246_s20 }
  0x9b   : > { %v1503_v3 = vmov 0.0  }
  0x9c   : > { %282 = vst [vmem:[%s281_s25 + $0x88] sm:$0x1] %v1503_v3  ;;  %p1251_p13 = por %p1250_p12, %p1249_p11 }
  0x9e   : > { %p1252_p3 = pnand %p1251_p13, %p1247_p6 }
  0xa0   : > { %1255 = shalt.err (!%p1252_p3)  }
  0xa1   : > { %s1256_s11 = sshra.s32 %s296_s8, 4  ;;  %s1257_s11 = int_to_ptr.vmem [resolvable:$true] %s1256_s11 }
  0xa2   : > { %s1258_s22 = scalar_lea.vmem %s1257_s11, 136  ;;  %p1261_p5 = scmp.lt.s32.totalorder %s1257_s11, [#allocation2] }
  0xa3   : > { %p1259_p8 = scmp.ne.s32.totalorder %s1257_s11, %s1258_s22  ;;  %p1262_p9 = scmp.lt.s32.totalorder %s1681_s23, %s1258_s22 }
  0xa5   : > { %p1263_p7 = por %p1262_p9, %p1261_p5 }
  0xa7   : > { %p1264_p10 = pnand %p1263_p7, %p1259_p8 }
  0xa9   : > { %1267 = shalt.err (!%p1264_p10)  }
  0xaa   : > { %298 = dma.hbm_to_vmem [thread:$0]  %s294_s28, 2176, %s296_s8, %s285_s9 }
  0xab PF: > { %p299_p0 = scmp.gt.s32.totalorder %s1740_s14, 0  ;;  %p300_p1 = scmp.lt.s32.totalorder %s1740_s14, 3 }
  0xac   : > { %s2170_s29 = sshll.u32 %s1478_s15, 7  ;;  %s309_s6 = smul.u32 144, %s1743_s27 }
  0xad   : > { %s951_s21 = sadd.s32 128, %s2170_s29  ;;  %p1769_p2 = pnand %p300_p1, %p299_p0 }
  0xae   : > { %s930_s24 = sadd.s32 4294967288, %s951_s21  ;;  %s310_s14 = scalar_lea.vmem [#allocation2], %s309_s6 }
  0xaf   : > { %s2171_s10 = scalar_select %p1769_p2, 1, 0 }
  0xb0   : > { %s307_s25 = sadd.s32 %s930_s24, %s1636_s7  ;;  %s321_s20 = sshll.u32 %s310_s14, 4  ;;  %s322_s20 = int_to_ptr.vmem [resolvable:$true] %s321_s20 }
  0xb1   : > { %s308_s9 = scalar_lea.hbm %s2134_s0, %s307_s25  ;;  %s311_s30 = scalar_lea.sflag [#allocation3], %s1743_s27 }
  0xb2   : > { %s1777_s18 = sshll.u32 %s308_s9, 4  ;;  %p1272_p6 = pneg %p1769_p2  ;;  %s320_s18 = int_to_ptr.hbm [resolvable:$true] %s1777_s18 }
  0xb3   : > { %s1268_s17 = sshra.s32 %s320_s18, 4  ;;  %s1269_s17 = int_to_ptr.hbm [resolvable:$true] %s1268_s17 }
  0xb4   : > { %s1270_s11 = scalar_lea.hbm %s1269_s17, 137  ;;  %p1276_p13 = scmp.lt.s32.totalorder %s1269_s17, %s2134_s0 }
  0xb5   : > { %p1271_p4 = scmp.ne.s32.totalorder %s1269_s17, %s1270_s11  ;;  %p1277_p3 = scmp.lt.s32.totalorder %s1662_s1, %s1270_s11 }
  0xb7   : > { %p1273_p11 = pnand %p1272_p6, %p1271_p4  ;;  %p1278_p8 = por %p1277_p3, %p1276_p13 }
  0xb9   : > { %p1274_p12 = pneg %p1273_p11 }
  0xbb   : > { %p1279_p5 = pnand %p1278_p8, %p1274_p12 }
  0xbd   : > { %1282 = shalt.err (!%p1279_p5)  }
  0xbe   : > { %s1283_s29 = sshra.s32 %s322_s20, 4  ;;  %s1284_s29 = int_to_ptr.vmem [resolvable:$true] %s1283_s29 }
  0xbf   : > { %s1285_s27 = scalar_lea.vmem %s1284_s29, 137  ;;  %p1291_p0 = scmp.lt.s32.totalorder %s1284_s29, [#allocation2] }
  0xc0   : > { %p1286_p9 = scmp.ne.s32.totalorder %s1284_s29, %s1285_s27  ;;  %p1292_p1 = scmp.lt.s32.totalorder %s1681_s23, %s1285_s27 }
  0xc2   : > { %p1288_p7 = pnand %p1286_p9, %p1272_p6  ;;  %p1293_p2 = por %p1292_p1, %p1291_p0 }
  0xc4   : > { %p1289_p10 = pneg %p1288_p7 }
  0xc6   : > { %p1294_p4 = pnand %p1293_p2, %p1289_p10 }
  0xc8   : > { %1297 = shalt.err (!%p1294_p4)  }
  0xc9   : > { %p2172_p11 = scmp.ne.s32.totalorder %s2171_s10, 0 }
  0xcb   : > { %1013 = dma.hbm_to_vmem [thread:$0]  (!%p2172_p11), %s320_s18, 2192, %s322_s20, %s311_s30 }
  0xcc PF: > { %p931_p12 = scmp.le.s32.totalorder %s1478_s15, 0 }
  0xcd   : > { %p1033_p13 = scmp.eq.s32.totalorder (!%p931_p12), %s1478_s15, 0  ;;  %s332_s1 = scalar_lea.sflag (!%p931_p12), [#allocation3], %s2195_s5 }
  0xce   : > { %328 = sbr.rel (%p931_p12) target bundleno = 306 (0x132), region = 92 }
  0xd3   : > { %1451 = dma.done.wait (%p1033_p13), %s332_s1, 2064 }
  0xd4   : > { %1453 = vsyncadd (%p1033_p13), %s332_s1, 4294965232  ;;  %p1034_p6 = scmp.eq.s32.totalorder %s1478_s15, 3 }
  0xd6   : > { %1455 = dma.done.wait (%p1034_p6), %s332_s1, 2176 }
  0xd7   : > { %1457 = vsyncadd (%p1034_p6), %s332_s1, 4294965120  ;;  %p934_p2 = scmp.ge.s32.totalorder %s1478_s15, 3 }
  0xd9   : > { %347 = sbr.rel (%p934_p2) target bundleno = 306 (0x132), region = 104 }
  0xde   : > { %1458 = dma.done.wait %s332_s1, 2192 }
  0xdf   : > { %1459 = vsyncadd %s332_s1, 4294965104  ;;  %s1800_s23 = sadd.s32 1, %s1478_s15  ;;  %s1803_s21 = ssub.s32 1, %s2195_s5 }
  0xe0   : > { %p935_p3 = scmp.ne.s32.totalorder %s1800_s23, 0 }
  0xe1   : > { %s360_s6 = smul.u32 (!%p935_p3), 144, %s1803_s21  ;;  %s936_s10 = sshll.u32 (!%p935_p3), %s1482_s16, 9 }
  0xe2   : > { %359 = sbr.rel (%p935_p3) target bundleno = 250 (0xfa), region = 108  ;;  %s364_s28 = scalar_lea.hbm (!%p935_p3), %s2134_s0, %s936_s10 }
  0xe3   : > { %s375_s8 = sshll.u32 (!%p935_p3), %s364_s28, 4  ;;  %s361_s9 = scalar_lea.vmem (!%p935_p3), [#allocation2], %s360_s6  ;;  %s376_s8 = int_to_ptr.hbm [resolvable:$true] %s375_s8 }
  0xe4   : > { %s847_s18 = scalar_lea.vmem (!%p935_p3), %s361_s9, 8 [#allocation2]  ;;  %s367_s20 = scalar_lea.sflag (!%p935_p3), [#allocation3], %s1803_s21 }
  0xe5   : > { %s377_s14 = sshll.u32 (!%p935_p3), %s847_s18, 4  ;;  %s1298_s30 = sshra.s32 (!%p935_p3), %s376_s8, 4  ;;  %s378_s14 = int_to_ptr.vmem [resolvable:$true] %s377_s14  ;;  %s1299_s30 = int_to_ptr.hbm [resolvable:$true] %s1298_s30 }
  0xe6   : > { %s1300_s17 = scalar_lea.hbm (!%p935_p3), %s1299_s30, 129  ;;  %s1302_s22 = scalar_lea.hbm (!%p935_p3), %s2134_s0, 1024 }
  0xe7   : > { %v1504_v4 = vmov 0.0   ;;  %p1301_p8 = scmp.ne.s32.totalorder %s1299_s30, %s1300_s17  ;;  %p1303_p5 = scmp.lt.s32.totalorder %s1299_s30, %s2134_s0 }
  0xe8   : > { %362 = vst [vmem:[%s361_s9] sm:$0xff] %v1504_v4  ;;  %p1304_p9 = scmp.lt.s32.totalorder %s1302_s22, %s1300_s17 }
  0xea   : > { %p1305_p7 = por %p1304_p9, %p1303_p5 }
  0xec   : > { %p1306_p10 = pnand %p1305_p7, %p1301_p8 }
  0xee   : > { %1309 = shalt.err (!%p1306_p10)  }
  0xef   : > { %s1310_s1 = sshra.s32 %s378_s14, 4  ;;  %s1505_s10 = smov [#allocation2]   ;;  %s1311_s1 = int_to_ptr.vmem [resolvable:$true] %s1310_s1 }
  0xf0   : > { %s1312_s6 = scalar_lea.vmem %s1311_s1, 129  ;;  %s1314_s24 = scalar_lea.vmem %s1505_s10, 288 }
  0xf1   : > { %p1313_p0 = scmp.ne.s32.totalorder %s1311_s1, %s1312_s6  ;;  %p1315_p1 = scmp.lt.s32.totalorder %s1311_s1, [#allocation2] }
  0xf2   : > { %p1316_p4 = scmp.lt.s32.totalorder %s1314_s24, %s1312_s6 }
  0xf4   : > { %p1317_p11 = por %p1316_p4, %p1315_p1 }
  0xf6   : > { %p1318_p12 = pnand %p1317_p11, %p1313_p0 }
  0xf8   : > { %1321 = shalt.err (!%p1318_p12)  }
  0xf9   : > { %380 = dma.hbm_to_vmem [thread:$0]  %s376_s8, 2064, %s378_s14, %s367_s20 }
  0xfa PF: > { %p937_p13 = scmp.ne.s32.totalorder %s1800_s23, 3 }
  0xfb   : > { %s385_s25 = smul.u32 (!%p937_p13), 144, %s1803_s21  ;;  %s938_s28 = sshll.u32 (!%p937_p13), %s1482_s16, 9 }
  0xfc   : > { %384 = sbr.rel (%p937_p13) target bundleno = 276 (0x114), region = 116  ;;  %s852_s30 = scalar_lea.hbm (!%p937_p13), %s2134_s0, %s938_s28 }
  0xfd   : > { %s853_s17 = scalar_lea.hbm (!%p937_p13), %s852_s30, 376  ;;  %s386_s11 = scalar_lea.vmem (!%p937_p13), [#allocation2], %s385_s25 }
  0xfe   : > { %s401_s7 = sshll.u32 (!%p937_p13), %s386_s11, 4  ;;  %s399_s22 = sshll.u32 (!%p937_p13), %s853_s17, 4  ;;  %s402_s7 = int_to_ptr.vmem [resolvable:$true] %s401_s7  ;;  %s400_s22 = int_to_ptr.hbm [resolvable:$true] %s399_s22 }
  0xff   : > { %s391_s8 = scalar_lea.sflag (!%p937_p13), [#allocation3], %s1803_s21  ;;  %s1322_s14 = sshra.s32 (!%p937_p13), %s400_s22, 4  ;;  %s1323_s14 = int_to_ptr.hbm [resolvable:$true] %s1322_s14 }
 0x100   : > { %s1324_s20 = scalar_lea.hbm (!%p937_p13), %s1323_s14, 136  ;;  %s1326_s1 = scalar_lea.hbm (!%p937_p13), %s2134_s0, 1024 }
 0x101   : > { %v1506_v5 = vmov 0.0   ;;  %p1325_p6 = scmp.ne.s32.totalorder %s1323_s14, %s1324_s20  ;;  %p1327_p2 = scmp.lt.s32.totalorder %s1323_s14, %s2134_s0 }
 0x102   : > { %387 = vst [vmem:[%s386_s11 + $0x88] sm:$0x1] %v1506_v5  ;;  %p1328_p3 = scmp.lt.s32.totalorder %s1326_s1, %s1324_s20 }
 0x104   : > { %p1329_p8 = por %p1328_p3, %p1327_p2 }
 0x106   : > { %p1330_p5 = pnand %p1329_p8, %p1325_p6 }
 0x108   : > { %1333 = shalt.err (!%p1330_p5)  }
 0x109   : > { %s1334_s24 = sshra.s32 %s402_s7, 4  ;;  %s1507_s28 = smov [#allocation2]   ;;  %s1335_s24 = int_to_ptr.vmem [resolvable:$true] %s1334_s24 }
 0x10a   : > { %s1336_s25 = scalar_lea.vmem %s1335_s24, 136  ;;  %s1338_s9 = scalar_lea.vmem %s1507_s28, 288 }
 0x10b   : > { %p1337_p9 = scmp.ne.s32.totalorder %s1335_s24, %s1336_s25  ;;  %p1339_p7 = scmp.lt.s32.totalorder %s1335_s24, [#allocation2] }
 0x10c   : > { %p1340_p10 = scmp.lt.s32.totalorder %s1338_s9, %s1336_s25 }
 0x10e   : > { %p1341_p0 = por %p1340_p10, %p1339_p7 }
 0x110   : > { %p1342_p1 = pnand %p1341_p0, %p1337_p9 }
 0x112   : > { %1345 = shalt.err (!%p1342_p1)  }
 0x113   : > { %404 = dma.hbm_to_vmem [thread:$0]  %s400_s22, 2176, %s402_s7, %s391_s8 }
 0x114 PF: > { %p405_p4 = scmp.gt.s32.totalorder %s1800_s23, 0  ;;  %p406_p11 = scmp.lt.s32.totalorder %s1800_s23, 3 }
 0x115   : > { %s952_s18 = sshll.u32 %s1478_s15, 7  ;;  %s941_s30 = sshll.u32 %s1482_s16, 9 }
 0x116   : > { %p1835_p12 = pnand %p406_p11, %p405_p4  ;;  %s953_s11 = sadd.s32 128, %s952_s18 }
 0x117   : > { %s940_s14 = sadd.s32 4294967288, %s953_s11  ;;  %s416_s7 = smul.u32 144, %s1803_s21 }
 0x118   : > { %s414_s22 = sadd.s32 %s941_s30, %s940_s14  ;;  %s418_s6 = scalar_lea.sflag [#allocation3], %s1803_s21 }
 0x119   : > { %s415_s29 = scalar_lea.hbm %s2134_s0, %s414_s22  ;;  %s417_s23 = scalar_lea.vmem [#allocation2], %s416_s7 }
 0x11a   : > { %s1843_s27 = sshll.u32 %s415_s29, 4  ;;  %s428_s1 = sshll.u32 %s417_s23, 4  ;;  %s427_s27 = int_to_ptr.hbm [resolvable:$true] %s1843_s27  ;;  %s1846_s1 = int_to_ptr.vmem [resolvable:$true] %s428_s1 }
 0x11b   : > { %s1346_s10 = sshra.s32 %s427_s27, 4  ;;  %p1350_p6 = pneg %p1835_p12  ;;  %s1347_s10 = int_to_ptr.hbm [resolvable:$true] %s1346_s10 }
 0x11c   : > { %s1348_s24 = scalar_lea.hbm %s1347_s10, 137  ;;  %s1353_s9 = scalar_lea.hbm %s2134_s0, 1024 }
 0x11d   : > { %p1349_p13 = scmp.ne.s32.totalorder %s1347_s10, %s1348_s24  ;;  %p1354_p8 = scmp.lt.s32.totalorder %s1347_s10, %s2134_s0 }
 0x11e   : > { %p1355_p5 = scmp.lt.s32.totalorder %s1353_s9, %s1348_s24 }
 0x11f   : > { %p1351_p2 = pnand %p1350_p6, %p1349_p13 }
 0x120   : > { %p1356_p9 = por %p1355_p5, %p1354_p8 }
 0x121   : > { %p1352_p3 = pneg %p1351_p2 }
 0x123   : > { %p1357_p7 = pnand %p1356_p9, %p1352_p3 }
 0x125   : > { %1360 = shalt.err (!%p1357_p7)  }
 0x126   : > { %s1361_s21 = sshra.s32 %s1846_s1, 4  ;;  %s1508_s14 = smov [#allocation2]   ;;  %s1362_s21 = int_to_ptr.vmem [resolvable:$true] %s1361_s21 }
 0x127   : > { %s1363_s11 = scalar_lea.vmem %s1362_s21, 137  ;;  %s1368_s7 = scalar_lea.vmem %s1508_s14, 288 }
 0x128   : > { %p1364_p10 = scmp.ne.s32.totalorder %s1362_s21, %s1363_s11  ;;  %p1369_p4 = scmp.lt.s32.totalorder %s1362_s21, [#allocation2] }
 0x129   : > { %p1370_p11 = scmp.lt.s32.totalorder %s1368_s7, %s1363_s11 }
 0x12a   : > { %p1366_p0 = pnand %p1364_p10, %p1350_p6 }
 0x12b   : > { %p1371_p13 = por %p1370_p11, %p1369_p4 }
 0x12c   : > { %p1367_p1 = pneg %p1366_p0 }
 0x12e   : > { %p1372_p2 = pnand %p1371_p13, %p1367_p1 }
 0x130   : > { %1375 = shalt.err (!%p1372_p2)  }
 0x131   : > { %1019 = dma.hbm_to_vmem [thread:$0]  (!%p1835_p12), %s427_s27, 2192, %s1846_s1, %s418_s6 }
 0x132 PF: > { %s432_s17 = smul.u32 144, %s2195_s5  ;;  %s943_s20 = sshll.u32 %s1478_s15, 4 }
 0x133   : > { %v497_v6 = vld [vmem:[#allocation4 + $0x78] sm:$0xff]  ;;  %v496_v8 = vld [vmem:[#allocation4 + $0x70] sm:$0xff]  ;;  %v495_v11 = vld [vmem:[#allocation4 + $0x68] sm:$0xff]  ;;  %s944_s29 = sshll.u32 %s1482_s16, 6  ;;  %s760_s6 = sshll.u32 %s1631_s4, 4  ;;  %s761_s6 = int_to_ptr.vmem [resolvable:$true] %s760_s6 }
 0x134   : > { %v1871_v7 = vld [vmem:[#allocation4 + $0x178] sm:$0xff]  ;;  %954 = vmatpush.msra.mxu3 %v497_v6  ;;  %v1874_v9 = vld [vmem:[#allocation4 + $0x170] sm:$0xff]  ;;  %534 = vmatpush.msra.mxu0 %v497_v6  ;;  %v1879_v12 = vld [vmem:[#allocation4 + $0x168] sm:$0xff]  ;;  %s1961_s5 = scalar_lea.vmem [#allocation2], %s432_s17  ;;  %s757_s27 = sadd.s32 %s944_s29, %s943_s20 }
 0x135   : > { %664 = vmatpush.msra.mxu2 %v1871_v7  ;;  %v1876_v10 = vld [vmem:[#allocation4 + $0xf8] sm:$0xff]  ;;  %v1881_v13 = vld [vmem:[#allocation4 + $0xf0] sm:$0xff]  ;;  %v1884_v14 = vld [vmem:[#allocation4 + $0xe8] sm:$0xff]  ;;  %s945_s23 = sshll.u32 %s757_s27, 3  ;;  %s2174_s24 = sand.u32 1, %s1470_s13  }
 0x136   : > { %599 = vmatpush.msra.mxu1 %v1876_v10  ;;  %955 = vmatpush.msra.mxu3 %v496_v8  ;;  %v494_v15 = vld [vmem:[#allocation4 + $0x60] sm:$0xff]  ;;  %v493_v18 = vld [vmem:[#allocation4 + $0x58] sm:$0xff]  ;;  %v492_v21 = vld [vmem:[#allocation4 + $0x50] sm:$0xff]  ;;  %s759_s1 = scalar_lea.hbm %s2137_s3, %s945_s23  ;;  %s746_s25 = scalar_lea.sflag [#allocation6], %s2174_s24 }
 0x137   : > { %665 = vmatpush.msra.mxu2 %v1874_v9  ;;  %535 = vmatpush.msra.mxu0 %v496_v8  ;;  %v1887_v16 = vld [vmem:[#allocation4 + $0x160] sm:$0xff]  ;;  %v1893_v19 = vld [vmem:[#allocation4 + $0x158] sm:$0xff]  ;;  %v1899_v22 = vld [vmem:[#allocation4 + $0x150] sm:$0xff]  ;;  %s762_s10 = sshll.u32 %s759_s1, 4  ;;  %p2175_p6 = scmp.ne.s32.totalorder %s2156_s26, 0  ;;  %s763_s10 = int_to_ptr.hbm [resolvable:$true] %s762_s10 }
 0x138   : > { %600 = vmatpush.msra.mxu1 %v1881_v13  ;;  %956 = vmatpush.msra.mxu3 %v495_v11  ;;  %v1890_v17 = vld [vmem:[#allocation4 + $0xe0] sm:$0xff]  ;;  %v1896_v20 = vld [vmem:[#allocation4 + $0xd8] sm:$0xff]  ;;  %v1902_v23 = vld [vmem:[#allocation4 + $0xd0] sm:$0xff]  ;;  %s1390_s28 = sshra.s32 %s763_s10, 4  ;;  %s1396_s21 = scalar_lea.hbm %s2137_s3, 1024  ;;  %s1391_s28 = int_to_ptr.hbm [resolvable:$true] %s1390_s28 }
 0x139   : > { %666 = vmatpush.msra.mxu2 %v1879_v12  ;;  %536 = vmatpush.msra.mxu0 %v495_v11  ;;  %v491_v24 = vld [vmem:[#allocation4 + $0x48] sm:$0xff]  ;;  %v490_v27 = vld [vmem:[#allocation4 + $0x40] sm:$0xff]  ;;  %v489_v30 = vld [vmem:[#allocation4 + $0x38] sm:$0xff]  ;;  %s1392_s9 = scalar_lea.hbm %s1391_s28, 128  ;;  %p1397_p5 = scmp.lt.s32.totalorder %s1391_s28, %s2137_s3 }
 0x13a   : > { %601 = vmatpush.msra.mxu1 %v1884_v14  ;;  %957 = vmatpush.msra.mxu3 %v494_v15  ;;  %v1905_v25 = vld [vmem:[#allocation4 + $0x148] sm:$0xff]  ;;  %v1911_v28 = vld [vmem:[#allocation4 + $0x140] sm:$0xff]  ;;  %v1917_v31 = vld [vmem:[#allocation4 + $0x138] sm:$0xff]  ;;  %p1393_p12 = scmp.ne.s32.totalorder %s1391_s28, %s1392_s9  ;;  %p1398_p9 = scmp.lt.s32.totalorder %s1396_s21, %s1392_s9 }
 0x13b   : > { %667 = vmatpush.msra.mxu2 %v1887_v16  ;;  %537 = vmatpush.msra.mxu0 %v494_v15  ;;  %v1908_v26 = vld [vmem:[#allocation4 + $0xc8] sm:$0xff]  ;;  %v1914_v29 = vld [vmem:[#allocation4 + $0xc0] sm:$0xff]  ;;  %v1920_v32 = vld [vmem:[#allocation4 + $0xb8] sm:$0xff] }
 0x13c   : > { %602 = vmatpush.msra.mxu1 %v1890_v17  ;;  %958 = vmatpush.msra.mxu3 %v493_v18  ;;  %v488_v33 = vld [vmem:[#allocation4 + $0x30] sm:$0xff]  ;;  %v487_v36 = vld [vmem:[#allocation4 + $0x28] sm:$0xff]  ;;  %v486_v39 = vld [vmem:[#allocation4 + $0x20] sm:$0xff]  ;;  %p1394_p3 = pnand %p1393_p12, %p2175_p6  ;;  %p1399_p7 = por %p1398_p9, %p1397_p5 }
 0x13d   : > { %668 = vmatpush.msra.mxu2 %v1893_v19  ;;  %538 = vmatpush.msra.mxu0 %v493_v18  ;;  %v1923_v34 = vld [vmem:[#allocation4 + $0x130] sm:$0xff]  ;;  %v1929_v37 = vld [vmem:[#allocation4 + $0x128] sm:$0xff]  ;;  %v1935_v40 = vld [vmem:[#allocation4 + $0x120] sm:$0xff] }
 0x13e   : > { %603 = vmatpush.msra.mxu1 %v1896_v20  ;;  %959 = vmatpush.msra.mxu3 %v492_v21  ;;  %v1926_v35 = vld [vmem:[#allocation4 + $0xb0] sm:$0xff]  ;;  %v1932_v38 = vld [vmem:[#allocation4 + $0xa8] sm:$0xff]  ;;  %v1938_v41 = vld [vmem:[#allocation4 + $0xa0] sm:$0xff]  ;;  %p1395_p8 = pneg %p1394_p3 }
 0x13f   : > { %669 = vmatpush.msra.mxu2 %v1899_v22  ;;  %539 = vmatpush.msra.mxu0 %v492_v21  ;;  %v485_v42 = vld [vmem:[#allocation4 + $0x18] sm:$0xff]  ;;  %v484_v45 = vld [vmem:[#allocation4 + $0x10] sm:$0xff]  ;;  %v483_v48 = vld [vmem:[#allocation4 + $0x8] sm:$0xff] }
 0x140   : > { %604 = vmatpush.msra.mxu1 %v1902_v23  ;;  %960 = vmatpush.msra.mxu3 %v491_v24  ;;  %v1941_v43 = vld [vmem:[#allocation4 + $0x118] sm:$0xff]  ;;  %v1948_v46 = vld [vmem:[#allocation4 + $0x110] sm:$0xff]  ;;  %v1954_v49 = vld [vmem:[#allocation4 + $0x108] sm:$0xff]  ;;  %p1400_p10 = pnand %p1399_p7, %p1395_p8 }
 0x141   : > { %670 = vmatpush.msra.mxu2 %v1905_v25  ;;  %540 = vmatpush.msra.mxu0 %v491_v24  ;;  %v1945_v44 = vld [vmem:[#allocation4 + $0x98] sm:$0xff]  ;;  %v1951_v47 = vld [vmem:[#allocation4 + $0x90] sm:$0xff]  ;;  %v499_v50 = vld [vmem:[#allocation4 + $0x88] sm:$0xff] }
 0x142   : > { %605 = vmatpush.msra.mxu1 %v1908_v26  ;;  %961 = vmatpush.msra.mxu3 %v490_v27  ;;  %v482_v51 = vld [vmem:[#allocation4] sm:$0xff]  ;;  %v450_v57 = vld [vmem:[%s1961_s5 + $0x8] sm:$0xff]  ;;  %v452_v1 = vld [vmem:[%s1961_s5 + $0x18] sm:$0xff] }
 0x143   : > { %671 = vmatpush.msra.mxu2 %v1911_v28  ;;  %541 = vmatpush.msra.mxu0 %v490_v27  ;;  %v1958_v52 = vld [vmem:[#allocation4 + $0x100] sm:$0xff]  ;;  %v462_v6 = vld [vmem:[%s1961_s5 + $0x68] sm:$0xff] }
 0x144   : > { %606 = vmatpush.msra.mxu1 %v1914_v29  ;;  %962 = vmatpush.msra.mxu3 %v489_v30  ;;  %v446_v53 = vld [vmem:[%s1961_s5 + $0x67] sm:$0xff]  ;;  %v447_v58 = vld [vmem:[%s1961_s5 + $0x6f] sm:$0xff]  ;;  %v448_v62 = vld [vmem:[%s1961_s5 + $0x77] sm:$0xff] }
 0x145   : > { %672 = vmatpush.msra.mxu2 %v1917_v31  ;;  %542 = vmatpush.msra.mxu0 %v489_v30  ;;  %v466_v54 = vld [vmem:[%s1961_s5 + $0x9] sm:$0xff]  ;;  %v467_v59 = vld [vmem:[%s1961_s5 + $0x11] sm:$0xff]  ;;  %v468_v63 = vld [vmem:[%s1961_s5 + $0x19] sm:$0xff] }
 0x146   : > { %607 = vmatpush.msra.mxu1 %v1920_v32  ;;  %963 = vmatpush.msra.mxu3 %v488_v33  ;;  %v434_v55 = vld [vmem:[%s1961_s5 + $0x7] sm:$0xff]  ;;  %v435_v60 = vld [vmem:[%s1961_s5 + $0xf] sm:$0xff]  ;;  %v436_v0 = vld [vmem:[%s1961_s5 + $0x17] sm:$0xff] }
 0x147   : > { %673 = vmatpush.msra.mxu2 %v1923_v34  ;;  %543 = vmatpush.msra.mxu0 %v488_v33  ;;  %v498_v56 = vld [vmem:[#allocation4 + $0x80] sm:$0xff]  ;;  %v454_v11 = vld [vmem:[%s1961_s5 + $0x28] sm:$0xff]  ;;  %v460_v33 = vld [vmem:[%s1961_s5 + $0x58] sm:$0xff] }
 0x148   : > { %608 = vmatpush.msra.mxu1 %v1926_v35  ;;  %964 = vmatpush.msra.mxu3 %v487_v36  ;;  %v451_v61 = vld [vmem:[%s1961_s5 + $0x10] sm:$0xff]  ;;  %v449_v2 = vld [vmem:[%s1961_s5 + $0x7f] sm:$0xff]  ;;  %v442_v24 = vld [vmem:[%s1961_s5 + $0x47] sm:$0xff] }
 0x149   : > { %674 = vmatpush.msra.mxu2 %v1929_v37  ;;  %544 = vmatpush.msra.mxu0 %v487_v36  ;;  %v469_v3 = vld [vmem:[%s1961_s5 + $0x21] sm:$0xff]  ;;  %v470_v8 = vld [vmem:[%s1961_s5 + $0x29] sm:$0xff]  ;;  %v479_v27 = vld [vmem:[%s1961_s5 + $0x71] sm:$0xff] }
 0x14a   : > { %609 = vmatpush.msra.mxu1 %v1932_v38  ;;  %965 = vmatpush.msra.mxu3 %v486_v39  ;;  %v437_v4 = vld [vmem:[%s1961_s5 + $0x1f] sm:$0xff]  ;;  %v439_v15 = vld [vmem:[%s1961_s5 + $0x2f] sm:$0xff] }
 0x14b   : > { %675 = vmatpush.msra.mxu2 %v1935_v40  ;;  %545 = vmatpush.msra.mxu0 %v486_v39  ;;  %v453_v5 = vld [vmem:[%s1961_s5 + $0x20] sm:$0xff] }
 0x14c   : > { %610 = vmatpush.msra.mxu1 %v1938_v41  ;;  %966 = vmatpush.msra.mxu3 %v485_v42  ;;  %v465_v18 = vld [vmem:[%s1961_s5 + $0x80] sm:$0xff] }
 0x14d   : > { %676 = vmatpush.msra.mxu2 %v1941_v43  ;;  %546 = vmatpush.msra.mxu0 %v485_v42  ;;  %v457_v21 = vld [vmem:[%s1961_s5 + $0x40] sm:$0xff] }
 0x14e   : > { %611 = vmatpush.msra.mxu1 %v1945_v44  ;;  %967 = vmatpush.msra.mxu3 %v484_v45  ;;  %v476_v30 = vld [vmem:[%s1961_s5 + $0x59] sm:$0xff] }
 0x14f   : > { %677 = vmatpush.msra.mxu2 %v1948_v46  ;;  %547 = vmatpush.msra.mxu0 %v484_v45  ;;  %v445_v36 = vld [vmem:[%s1961_s5 + $0x5f] sm:$0xff] }
 0x150   : > { %612 = vmatpush.msra.mxu1 %v1951_v47  ;;  %968 = vmatpush.msra.mxu3 %v483_v48 }
 0x151   : > { %678 = vmatpush.msra.mxu2 %v1954_v49  ;;  %548 = vmatpush.msra.mxu0 %v483_v48 }
 0x152   : > { %613 = vmatpush.msra.mxu1 %v499_v50  ;;  %969 = vmatpush.msra.mxu3 %v482_v51 }
 0x153   : > { %679 = vmatpush.msra.mxu2 %v1958_v52  ;;  %586 = vmatmul.f32.vlgmr.msra.gmra.mxu3 %v446_v53 }
 0x154   : > { %680 = vmatmul.f32.vlgmr.msra.gmra.mxu2 %v466_v54  ;;  %970 = vmatpush.msrb.mxu3 %v1876_v10  ;;  %v438_v10 = vld [vmem:[%s1961_s5 + $0x27] sm:$0xff] }
 0x155   : > { %549 = vmatpush.msra.mxu0 %v482_v51  ;;  %614 = vmatpush.msra.mxu1 %v498_v56 }
 0x156   : > { %550 = vmatmul.f32.vlgmr.msra.gmra.mxu0 %v434_v55  ;;  %971 = vmatpush.msrb.mxu3 %v1881_v13  ;;  %v463_v13 = vld [vmem:[%s1961_s5 + $0x70] sm:$0xff] }
 0x157   : > { %615 = vmatmul.f32.vlgmr.msra.gmra.mxu1 %v450_v57 }
 0x158   : > { %972 = vmatpush.msrb.mxu3 %v1884_v14  ;;  %v471_v14 = vld [vmem:[%s1961_s5 + $0x31] sm:$0xff] }
 0x15a   : > { %973 = vmatpush.msrb.mxu3 %v1890_v17  ;;  %v455_v17 = vld [vmem:[%s1961_s5 + $0x30] sm:$0xff] }
 0x15b   : > { %589 = vmatmul.f32.gmra.mxu3 %v447_v58 }
 0x15c   : > { %683 = vmatmul.f32.gmra.mxu2 %v467_v59  ;;  %974 = vmatpush.msrb.mxu3 %v1896_v20  ;;  %v441_v20 = vld [vmem:[%s1961_s5 + $0x3f] sm:$0xff] }
 0x15e   : > { %553 = vmatmul.f32.gmra.mxu0 %v435_v60  ;;  %975 = vmatpush.msrb.mxu3 %v1902_v23  ;;  %v478_v23 = vld [vmem:[%s1961_s5 + $0x69] sm:$0xff] }
 0x15f   : > { %618 = vmatmul.f32.gmra.mxu1 %v451_v61 }
 0x160   : > { %976 = vmatpush.msrb.mxu3 %v1908_v26  ;;  %v475_v26 = vld [vmem:[%s1961_s5 + $0x51] sm:$0xff] }
 0x162   : > { %977 = vmatpush.msrb.mxu3 %v1914_v29  ;;  %v459_v29 = vld [vmem:[%s1961_s5 + $0x50] sm:$0xff] }
 0x163   : > { %592 = vmatmul.f32.gmra.mxu3 %v448_v62 }
 0x164   : > { %686 = vmatmul.f32.gmra.mxu2 %v468_v63  ;;  %978 = vmatpush.msrb.mxu3 %v1920_v32  ;;  %v444_v32 = vld [vmem:[%s1961_s5 + $0x57] sm:$0xff] }
 0x166   : > { %556 = vmatmul.f32.gmra.mxu0 %v436_v0  ;;  %979 = vmatpush.msrb.mxu3 %v1926_v35  ;;  %v481_v35 = vld [vmem:[%s1961_s5 + $0x81] sm:$0xff] }
 0x167   : > { %621 = vmatmul.f32.gmra.mxu1 %v452_v1 }
 0x168   : > { %980 = vmatpush.msrb.mxu3 %v1932_v38  ;;  %v2045_v38 = vld [vmem:[%s2136_s2] ss:$0 sm:$0xff] }
 0x16a   : > { %981 = vmatpush.msrb.mxu3 %v1938_v41 }
 0x16b   : > { %595 = vmatmul.f32.gmra.mxu3 %v449_v2 }
 0x16c   : > { %689 = vmatmul.f32.gmra.mxu2 %v469_v3  ;;  %982 = vmatpush.msrb.mxu3 %v1945_v44 }
 0x16e   : > { %559 = vmatmul.f32.gmra.mxu0 %v437_v4  ;;  %983 = vmatpush.msrb.mxu3 %v1951_v47 }
 0x16f   : > { %624 = vmatmul.f32.gmra.mxu1 %v453_v5 }
 0x170   : > { %984 = vmatpush.msrb.mxu3 %v499_v50 }
 0x172   : > { %985 = vmatpush.msrb.mxu3 %v498_v56 }
 0x173   : > { %651 = vmatmul.f32.vlgmr.msrb.gmra.mxu3 %v462_v6 }
 0x174   : > { %692 = vmatmul.f32.gmra.mxu2 %v470_v8  ;;  %986 = vmatpush.msra.mxu3 %v1871_v7  ;;  %v464_v7 = vld [vmem:[%s1961_s5 + $0x78] sm:$0xff] }
 0x176   : > { %562 = vmatmul.f32.gmra.mxu0 %v438_v10  ;;  %987 = vmatpush.msra.mxu3 %v1874_v9  ;;  %v472_v9 = vld [vmem:[%s1961_s5 + $0x39] sm:$0xff] }
 0x177   : > { %627 = vmatmul.f32.gmra.mxu1 %v454_v11 }
 0x178   : > { %988 = vmatpush.msra.mxu3 %v1879_v12  ;;  %v440_v12 = vld [vmem:[%s1961_s5 + $0x37] sm:$0xff] }
 0x17a   : > { %989 = vmatpush.msra.mxu3 %v1887_v16  ;;  %v456_v16 = vld [vmem:[%s1961_s5 + $0x38] sm:$0xff] }
 0x17b   : > { %654 = vmatmul.f32.gmra.mxu3 %v463_v13 }
 0x17c   : > { %695 = vmatmul.f32.gmra.mxu2 %v471_v14  ;;  %990 = vmatpush.msra.mxu3 %v1893_v19  ;;  %v473_v19 = vld [vmem:[%s1961_s5 + $0x41] sm:$0xff] }
 0x17e   : > { %565 = vmatmul.f32.gmra.mxu0 %v439_v15  ;;  %991 = vmatpush.msra.mxu3 %v1899_v22  ;;  %v474_v22 = vld [vmem:[%s1961_s5 + $0x49] sm:$0xff] }
 0x17f   : > { %630 = vmatmul.f32.gmra.mxu1 %v455_v17 }
 0x180   : > { %992 = vmatpush.msra.mxu3 %v1905_v25  ;;  %v458_v25 = vld [vmem:[%s1961_s5 + $0x48] sm:$0xff] }
 0x182   : > { %993 = vmatpush.msra.mxu3 %v1911_v28  ;;  %v443_v28 = vld [vmem:[%s1961_s5 + $0x4f] sm:$0xff] }
 0x183   : > { %657 = vmatmul.f32.gmra.mxu3 %v464_v7 }
 0x184   : > { %698 = vmatmul.f32.gmra.mxu2 %v472_v9  ;;  %994 = vmatpush.msra.mxu3 %v1917_v31  ;;  %v480_v31 = vld [vmem:[%s1961_s5 + $0x79] sm:$0xff] }
 0x186   : > { %568 = vmatmul.f32.gmra.mxu0 %v440_v12  ;;  %995 = vmatpush.msra.mxu3 %v1923_v34  ;;  %v477_v34 = vld [vmem:[%s1961_s5 + $0x61] sm:$0xff] }
 0x187   : > { %633 = vmatmul.f32.gmra.mxu1 %v456_v16 }
 0x188   : > { %996 = vmatpush.msra.mxu3 %v1929_v37  ;;  %v461_v37 = vld [vmem:[%s1961_s5 + $0x60] sm:$0xff] }
 0x18a   : > { %997 = vmatpush.msra.mxu3 %v1935_v40 }
 0x18b   : > { %660 = vmatmul.f32.gmra.mxu3 %v465_v18 }
 0x18c   : > { %701 = vmatmul.f32.gmra.mxu2 %v473_v19  ;;  %998 = vmatpush.msra.mxu3 %v1941_v43 }
 0x18e   : > { %571 = vmatmul.f32.gmra.mxu0 %v441_v20  ;;  %999 = vmatpush.msra.mxu3 %v1948_v46 }
 0x18f   : > { %636 = vmatmul.f32.gmra.mxu1 %v457_v21 }
 0x190   : > { %1000 = vmatpush.msra.mxu3 %v1954_v49 }
 0x192   : > { %1001 = vmatpush.msra.mxu3 %v1958_v52 }
 0x193   : > { %716 = vmatmul.f32.vlgmr.msra.gmra.mxu3 %v478_v23 }
 0x194   : > { %704 = vmatmul.f32.gmra.mxu2 %v474_v22 }
 0x196   : > { %574 = vmatmul.f32.gmra.mxu0 %v442_v24 }
 0x197   : > { %639 = vmatmul.f32.gmra.mxu1 %v458_v25 }
 0x19b   : > { %719 = vmatmul.f32.gmra.mxu3 %v479_v27 }
 0x19c   : > { %707 = vmatmul.f32.gmra.mxu2 %v475_v26 }
 0x19e   : > { %577 = vmatmul.f32.gmra.mxu0 %v443_v28 }
 0x19f   : > { %642 = vmatmul.f32.gmra.mxu1 %v459_v29 }
 0x1a3   : > { %722 = vmatmul.f32.gmra.mxu3 %v480_v31 }
 0x1a4   : > { %710 = vmatmul.f32.gmra.mxu2 %v476_v30 }
 0x1a6   : > { %580 = vmatmul.f32.gmra.mxu0 %v444_v32 }
 0x1a7   : > { %645 = vmatmul.f32.gmra.mxu1 %v460_v33 }
 0x1ab   : > { %725 = vmatmul.f32.gmra.mxu3 %v481_v35 }
 0x1ac   : > { %713 = vmatmul.f32.gmra.mxu2 %v477_v34 }
 0x1ae   : > { %583 = vmatmul.f32.gmra.mxu0 %v445_v36 }
 0x1af   : > { %648 = vmatmul.f32.gmra.mxu1 %v461_v37 }
 0x1d3   : > { %v551_v39 = vpop.f32.mrf.mxu0 }
 0x1d4   : > { %v552_v40 = vadd.f32 %v2045_v38, %v551_v39  ;;  %v616_v41 = vpop.f32.mrf.mxu1 }
 0x1d6   : > { %v617_v42 = vadd.f32 %v616_v41, %v552_v40  ;;  %v587_v43 = vpop.f32.mrf.mxu3 }
 0x1d7   : > { %v681_v44 = vpop.f32.mrf.mxu2  ;;  %v588_v32 = vadd.f32 %v2045_v38, %v587_v43 }
 0x1d8   : > { %v682_v45 = vadd.f32 %v681_v44, %v617_v42 }
 0x1da   : > { %729 = vst [vmem:[%s1631_s4] sm:$0xff] %v682_v45 }
 0x1db   : > { %v554_v46 = vpop.f32.mrf.mxu0 }
 0x1dc   : > { %v555_v47 = vadd.f32 %v2045_v38, %v554_v46  ;;  %v619_v48 = vpop.f32.mrf.mxu1 }
 0x1de   : > { %v620_v49 = vadd.f32 %v619_v48, %v555_v47  ;;  %v2050_v50 = vpop.f32.mrf.mxu3 }
 0x1df   : > { %v684_v51 = vpop.f32.mrf.mxu2  ;;  %v591_v44 = vadd.f32 %v2045_v38, %v2050_v50 }
 0x1e0   : > { %v685_v52 = vadd.f32 %v684_v51, %v620_v49 }
 0x1e2   : > { %730 = vst [vmem:[%s1631_s4 + $0x8] sm:$0xff] %v685_v52 }
 0x1e3   : > { %v557_v53 = vpop.f32.mrf.mxu0 }
 0x1e4   : > { %v558_v54 = vadd.f32 %v2045_v38, %v557_v53  ;;  %v622_v55 = vpop.f32.mrf.mxu1 }
 0x1e6   : > { %v623_v56 = vadd.f32 %v622_v55, %v558_v54  ;;  %v2054_v57 = vpop.f32.mrf.mxu3 }
 0x1e7   : > { %v687_v58 = vpop.f32.mrf.mxu2  ;;  %v594_v54 = vadd.f32 %v2045_v38, %v2054_v57 }
 0x1e8   : > { %v688_v59 = vadd.f32 %v687_v58, %v623_v56 }
 0x1ea   : > { %731 = vst [vmem:[%s1631_s4 + $0x10] sm:$0xff] %v688_v59 }
 0x1eb   : > { %v560_v60 = vpop.f32.mrf.mxu0 }
 0x1ec   : > { %v561_v61 = vadd.f32 %v2045_v38, %v560_v60  ;;  %v625_v62 = vpop.f32.mrf.mxu1 }
 0x1ee   : > { %v626_v63 = vadd.f32 %v625_v62, %v561_v61  ;;  %v2058_v0 = vpop.f32.mrf.mxu3 }
 0x1ef   : > { %v690_v1 = vpop.f32.mrf.mxu2 }
 0x1f0   : > { %v691_v2 = vadd.f32 %v690_v1, %v626_v63  ;;  %v597_v63 = vadd.f32 %v2045_v38, %v2058_v0 }
 0x1f2   : > { %732 = vst [vmem:[%s1631_s4 + $0x18] sm:$0xff] %v691_v2 }
 0x1f3   : > { %v563_v3 = vpop.f32.mrf.mxu0 }
 0x1f4   : > { %v564_v4 = vadd.f32 %v2045_v38, %v563_v3  ;;  %v628_v5 = vpop.f32.mrf.mxu1 }
 0x1f6   : > { %v629_v6 = vadd.f32 %v628_v5, %v564_v4  ;;  %v652_v8 = vpop.f32.mrf.mxu3 }
 0x1f7   : > { %v693_v10 = vpop.f32.mrf.mxu2  ;;  %v653_v35 = vadd.f32 %v652_v8, %v588_v32 }
 0x1f8   : > { %v694_v11 = vadd.f32 %v693_v10, %v629_v6 }
 0x1fa   : > { %733 = vst [vmem:[%s1631_s4 + $0x20] sm:$0xff] %v694_v11 }
 0x1fb   : > { %v566_v13 = vpop.f32.mrf.mxu0 }
 0x1fc   : > { %v567_v14 = vadd.f32 %v2045_v38, %v566_v13  ;;  %v631_v15 = vpop.f32.mrf.mxu1 }
 0x1fe   : > { %v632_v17 = vadd.f32 %v631_v15, %v567_v14  ;;  %v655_v7 = vpop.f32.mrf.mxu3 }
 0x1ff   : > { %v696_v9 = vpop.f32.mrf.mxu2  ;;  %v656_v46 = vadd.f32 %v655_v7, %v591_v44 }
 0x200   : > { %v697_v12 = vadd.f32 %v696_v9, %v632_v17 }
 0x202   : > { %734 = vst [vmem:[%s1631_s4 + $0x28] sm:$0xff] %v697_v12 }
 0x203   : > { %v569_v16 = vpop.f32.mrf.mxu0 }
 0x204   : > { %v570_v18 = vadd.f32 %v2045_v38, %v569_v16  ;;  %v634_v19 = vpop.f32.mrf.mxu1 }
 0x206   : > { %v635_v20 = vadd.f32 %v634_v19, %v570_v18  ;;  %v658_v21 = vpop.f32.mrf.mxu3 }
 0x207   : > { %v699_v22 = vpop.f32.mrf.mxu2  ;;  %v659_v56 = vadd.f32 %v658_v21, %v594_v54 }
 0x208   : > { %v700_v23 = vadd.f32 %v699_v22, %v635_v20 }
 0x20a   : > { %735 = vst [vmem:[%s1631_s4 + $0x30] sm:$0xff] %v700_v23 }
 0x20b   : > { %v572_v24 = vpop.f32.mrf.mxu0 }
 0x20c   : > { %v573_v25 = vadd.f32 %v2045_v38, %v572_v24  ;;  %v637_v26 = vpop.f32.mrf.mxu1 }
 0x20e   : > { %v638_v27 = vadd.f32 %v637_v26, %v573_v25  ;;  %v661_v28 = vpop.f32.mrf.mxu3 }
 0x20f   : > { %v702_v29 = vpop.f32.mrf.mxu2  ;;  %v662_v3 = vadd.f32 %v661_v28, %v597_v63 }
 0x210   : > { %v703_v30 = vadd.f32 %v702_v29, %v638_v27 }
 0x212   : > { %736 = vst [vmem:[%s1631_s4 + $0x38] sm:$0xff] %v703_v30 }
 0x213   : > { %v575_v31 = vpop.f32.mrf.mxu0 }
 0x214   : > { %v576_v33 = vadd.f32 %v2045_v38, %v575_v31  ;;  %v640_v34 = vpop.f32.mrf.mxu1 }
 0x216   : > { %v641_v36 = vadd.f32 %v640_v34, %v576_v33  ;;  %v717_v39 = vpop.f32.mrf.mxu3 }
 0x217   : > { %v705_v37 = vpop.f32.mrf.mxu2  ;;  %v718_v41 = vadd.f32 %v717_v39, %v653_v35 }
 0x218   : > { %v706_v40 = vadd.f32 %v705_v37, %v641_v36 }
 0x219   : > { %741 = vst [vmem:[%s1631_s4 + $0x60] sm:$0xff] %v718_v41 }
 0x21a   : > { %737 = vst [vmem:[%s1631_s4 + $0x40] sm:$0xff] %v706_v40 }
 0x21b   : > { %v578_v42 = vpop.f32.mrf.mxu0 }
 0x21c   : > { %v579_v43 = vadd.f32 %v2045_v38, %v578_v42  ;;  %v643_v45 = vpop.f32.mrf.mxu1 }
 0x21e   : > { %v644_v47 = vadd.f32 %v643_v45, %v579_v43  ;;  %v720_v49 = vpop.f32.mrf.mxu3 }
 0x21f   : > { %v708_v48 = vpop.f32.mrf.mxu2  ;;  %v721_v52 = vadd.f32 %v720_v49, %v656_v46 }
 0x220   : > { %v709_v51 = vadd.f32 %v708_v48, %v644_v47 }
 0x221   : > { %742 = vst [vmem:[%s1631_s4 + $0x68] sm:$0xff] %v721_v52 }
 0x222   : > { %738 = vst [vmem:[%s1631_s4 + $0x48] sm:$0xff] %v709_v51 }
 0x223   : > { %v581_v53 = vpop.f32.mrf.mxu0 }
 0x224   : > { %v582_v50 = vadd.f32 %v2045_v38, %v581_v53  ;;  %v646_v55 = vpop.f32.mrf.mxu1 }
 0x226   : > { %v647_v58 = vadd.f32 %v646_v55, %v582_v50  ;;  %v723_v60 = vpop.f32.mrf.mxu3 }
 0x227   : > { %v711_v59 = vpop.f32.mrf.mxu2  ;;  %v724_v62 = vadd.f32 %v723_v60, %v659_v56 }
 0x228   : > { %v712_v61 = vadd.f32 %v711_v59, %v647_v58 }
 0x229   : > { %743 = vst [vmem:[%s1631_s4 + $0x70] sm:$0xff] %v724_v62 }
 0x22a   : > { %739 = vst [vmem:[%s1631_s4 + $0x50] sm:$0xff] %v712_v61 }
 0x22b   : > { %v584_v57 = vpop.f32.mrf.mxu0 }
 0x22c   : > { %v585_v1 = vadd.f32 %v2045_v38, %v584_v57  ;;  %v649_v2 = vpop.f32.mrf.mxu1 }
 0x22e   : > { %v650_v4 = vadd.f32 %v649_v2, %v585_v1  ;;  %v726_v6 = vpop.f32.mrf.mxu3 }
 0x22f   : > { %v714_v5 = vpop.f32.mrf.mxu2  ;;  %v727_v10 = vadd.f32 %v726_v6, %v662_v3 }
 0x230   : > { %v715_v8 = vadd.f32 %v714_v5, %v650_v4 }
 0x231   : > { %744 = vst [vmem:[%s1631_s4 + $0x78] sm:$0xff] %v727_v10 }
 0x232   : > { %740 = vst [vmem:[%s1631_s4 + $0x58] sm:$0xff] %v715_v8 }
 0x233   : > { %1403 = shalt.err (!%p1400_p10)
}
 0x234   : > { %s1509_s4 = smov 128   ;;  %s1510_s7 = smov 8  }
 0x235   : > { %1020 = dma.vmem_to_hbm [thread:$0]  (%p2175_p6), %s761_s6, 2048, %s763_s10, %s746_s25, %s1509_s4, %s1509_s4, %s1510_s7  }
 0x236 PF: > { %s2176_s17 = sld [smem:[#allocation41_spill]]  ;;  %p1035_p0 = scmp.ge.s32.totalorder %s1494_s19, 2 }
 0x237   : > { %s777_s5 = sand.u32 1, %s1466_s12  }
 0x238   : > { %s778_s22 = scalar_lea.sflag [#allocation6], %s777_s5 }
 0x23c   : > { %p2177_p1 = scmp.ne.s32.totalorder %s2176_s17, 0 }
 0x23e   : > { %p1027_p4 = pnand %p1035_p0, %p2177_p1 }
 0x240   : > { %p1028_p11 = pneg %p1027_p4 }
 0x242   : > { %1461 = dma.done.wait (%p1028_p11), %s778_s22, 2048  }
 0x243   : > { %1463 = vsyncadd (%p1028_p11), %s778_s22, 4294965248  ;;  %s17_s19 = sadd.s32 1, %s1494_s19   ;;  %s2178_s8 = sld [smem:[#allocation36_spill]] }
 0x244   : > { %p14_p13 = scmp.ge.s32.totalorder %s17_s19, 10   ;;  %s2179_s14 = sld [smem:[#allocation42_spill]] }
 0x245   : > { %s2180_s15 = sld [smem:[#allocation37_spill]]  ;;  %s2184_s12 = smov %s1470_s13 }
 0x246   : > { %s2181_s16 = sld [smem:[#allocation38_spill]]  ;;  %16 = sbr.rel (!%p14_p13) target bundleno = 8 (0x8), region = 191 }
 0x247   : > { %s2182_s17 = sld [smem:[#allocation39_spill]] }
 0x248   : > { %s2183_s18 = sld [smem:[#allocation40_spill]] }
 0x249   : > { %s2185_s13 = smov %s2178_s8 }
 0x24b   :  { %784 = vsyncpa [#allocation5], 1 }
 0x24c   :  { %786 = vsyncpa [#allocation5 + $0x1], 1 }
 0x24d   :  { %787 = vsyncpa [#allocation6], 1 }
 0x24e   :  { %789 = vsyncpa [#allocation6 + $0x1], 1 }
 0x24f   :  { %790 = vsyncmov [#allocation3] }
 0x252   :  { %s791_s26 = vpop.sfrf %790 }
 0x253   :  { %p948_p2 = scmp.ne.s32.totalorder %s791_s26, 0 }
 0x255   :  { %795 = shalt.err (%p948_p2)  }
 0x256   :  { %797 = vsyncmov [#allocation3 + $0x1] }
 0x259   :  { %s798_s20 = vpop.sfrf %797 }
 0x25a   :  { %p949_p12 = scmp.ne.s32.totalorder %s798_s20, 0 }
 0x25c   :  { %802 = shalt.err (%p949_p12)  }

</bundles_post_ra>
